<compile_context>
chip_gen: v6e
topology: v6e:2x2x1
jax: 0.10.0
libtpu: 0.0.40
codegen_flags: <defaults>
</compile_context>

<pallas_src>
import numpy as np
import jax
import jax.numpy as jnp
from jax.experimental import pallas as pl
from jax.experimental.pallas import tpu as pltpu

# ---- model dims (TPU-lane friendly) ----
MEM_DIM = 32            # memory.hidden_dim
E_FEAT_DIM = 32         # edge feature dim
TIME_DIM = 32           # temporal_encoder.dimension
MSG_DIM = 2 * MEM_DIM + E_FEAT_DIM + TIME_DIM   # = 128

# row-tile caps (multiple of 8; keeps double-buffered tiles well under VMEM
# even on v7x's 64 MiB / 32 MiB scoped default)
EDGE_TILE_CAP = 1024
NODE_TILE_CAP = 1024


def _round_up(x, m):
    return ((x + m - 1) // m) * m


def _choose_tile(rows, cap):
    t = min(cap, max(rows, 8))
    return _round_up(t, 8)


def _pad_rows(x, mult):
    pad = (-x.shape[0]) % mult
    if pad:
        x = jnp.pad(x, ((0, pad),) + ((0, 0),) * (x.ndim - 1))
    return x


# ---------------------------------------------------------------------------
# Kernel 1: fused gather + per-edge message construction (msg_fn_cat + TimeEncode)
#
# The per-batch node table (node_mem [NP,32], node_ts [1,NP]) stays resident in
# VMEM across all edge tiles (constant block index); per-edge rows are gathered
# with a one-hot MXU matmul (exact 0/1 selection).
# TODO(synk): for very large per-batch node counts the one-hot gather should be
# replaced with a scalar-prefetch / DMA gather; fine for TGN batch graphs.
# ---------------------------------------------------------------------------
def message_kernel(node_mem_ref, node_ts_ref, src_ref, dst_ref,
                   feat_ref, ets_ref, tw_ref, tb_ref, msg_ref):
    nmem = node_mem_ref[...]                       # [NP, MEM_DIM]
    nts = node_ts_ref[...]                         # [1, NP]
    tile = src_ref.shape[0]
    npad = nmem.shape[0]

    col = jax.lax.broadcasted_iota(jnp.int32, (tile, npad), 1)
    oh_src = (col == src_ref[...]).astype(jnp.float32)     # [tile, NP]
    oh_dst = (col == dst_ref[...]).astype(jnp.float32)     # [tile, NP]

    src_mem = jnp.dot(oh_src, nmem, preferred_element_type=jnp.float32)
    dst_mem = jnp.dot(oh_dst, nmem, preferred_element_type=jnp.float32)
    src_ts = jnp.sum(oh_src * nts, axis=1, keepdims=True)   # [tile, 1]

    # Fourier time encoding: cos(delta_t * w + b)   (f32 on VPU/EUP)
    dt = ets_ref[...] - src_ts
    te = jnp.cos(dt * tw_ref[...] + tb_ref[...])             # [tile, TIME_DIM]

    # write lane slices of the 128-lane output slab directly (no concat packing)
    msg_ref[:, 0:MEM_DIM] = src_mem
    msg_ref[:, MEM_DIM:2 * MEM_DIM] = dst_mem
    msg_ref[:, 2 * MEM_DIM:2 * MEM_DIM + E_FEAT_DIM] = feat_ref[...]
    msg_ref[:, 2 * MEM_DIM + E_FEAT_DIM:MSG_DIM] = te


def compute_messages(node_mem, node_ts, src, dst, edge_feats, edge_ts,
                     time_w, time_b):
    E = src.shape[0]
    n_nodes = node_mem.shape[0]

    node_mem_p = _pad_rows(node_mem.astype(jnp.float32), 8)
    NP = node_mem_p.shape[0]
    node_ts_row = jnp.pad(node_ts.astype(jnp.float32)[None, :],
                          ((0, 0), (0, NP - n_nodes)))

    tile = _choose_tile(E, EDGE_TILE_CAP)
    src_p = _pad_rows(src.astype(jnp.int32)[:, None], tile)
    dst_p = _pad_rows(dst.astype(jnp.int32)[:, None], tile)
    feat_p = _pad_rows(edge_feats.astype(jnp.float32), tile)
    ets_p = _pad_rows(edge_ts.astype(jnp.float32)[:, None], tile)
    EP = src_p.shape[0]

    msg = pl.pallas_call(
        message_kernel,
        out_shape=jax.ShapeDtypeStruct((EP, MSG_DIM), jnp.float32),
        grid=(EP // tile,),
        in_specs=[
            pl.BlockSpec((NP, MEM_DIM), lambda i: (0, 0)),   # node memory (resident)
            pl.BlockSpec((1, NP), lambda i: (0, 0)),         # node timestamps
            pl.BlockSpec((tile, 1), lambda i: (i, 0)),       # src ids
            pl.BlockSpec((tile, 1), lambda i: (i, 0)),       # dst ids
            pl.BlockSpec((tile, E_FEAT_DIM), lambda i: (i, 0)),
            pl.BlockSpec((tile, 1), lambda i: (i, 0)),       # edge timestamps
            pl.BlockSpec((1, TIME_DIM), lambda i: (0, 0)),
            pl.BlockSpec((1, TIME_DIM), lambda i: (0, 0)),
        ],
        out_specs=pl.BlockSpec((tile, MSG_DIM), lambda i: (i, 0)),
        compiler_params=pltpu.CompilerParams(
            dimension_semantics=("parallel",)),
    )(node_mem_p, node_ts_row, src_p, dst_p, feat_p, ets_p, time_w, time_b)
    return msg[:E]


# ---------------------------------------------------------------------------
# Kernel 2: GRUCell update (update_memory) — single fused K=160 MXU matmul.
#
# w_big : [MSG_DIM + MEM_DIM, 4*MEM_DIM], xh = [msg_bar | memory]
#   g = xh @ w_big + b_big, columns = [ r_pre | z_pre | i_n + b_in | h_n + b_hn ]
#   r = sig(g[:, 0:32]); z = sig(g[:, 32:64])
#   n = tanh(g[:, 64:96] + r * g[:, 96:128])
#   h' = (1 - z) * n + z * h
# ---------------------------------------------------------------------------
def gru_kernel(msg_ref, mem_ref, w_ref, b_ref, out_ref):
    x = msg_ref[...]                               # [tile, MSG_DIM]
    h = mem_ref[...]                               # [tile, MEM_DIM]
    xh = jnp.concatenate([x, h], axis=1)           # [tile, MSG_DIM + MEM_DIM]
    g = jnp.dot(xh, w_ref[...], preferred_element_type=jnp.float32) + b_ref[...]
    D = MEM_DIM
    r = jax.nn.sigmoid(g[:, 0:D])
    z = jax.nn.sigmoid(g[:, D:2 * D])
    n = jnp.tanh(g[:, 2 * D:3 * D] + r * g[:, 3 * D:4 * D])
    out_ref[...] = (1.0 - z) * n + z * h


def gru_update(msg_bar, memory, w_big, b_big):
    N = msg_bar.shape[0]
    tile = _choose_tile(N, NODE_TILE_CAP)
    msg_p = _pad_rows(msg_bar.astype(jnp.float32), tile)
    mem_p = _pad_rows(memory.astype(jnp.float32), tile)
    NPad = msg_p.shape[0]

    out = pl.pallas_call(
        gru_kernel,
        out_shape=jax.ShapeDtypeStruct((NPad, MEM_DIM), jnp.float32),
        grid=(NPad // tile,),
        in_specs=[
            pl.BlockSpec((tile, MSG_DIM), lambda i: (i, 0)),
            pl.BlockSpec((tile, MEM_DIM), lambda i: (i, 0)),
            pl.BlockSpec((MSG_DIM + MEM_DIM, 4 * MEM_DIM), lambda i: (0, 0)),
            pl.BlockSpec((1, 4 * MEM_DIM), lambda i: (0, 0)),
        ],
        out_specs=pl.BlockSpec((tile, MEM_DIM), lambda i: (i, 0)),
        compiler_params=pltpu.CompilerParams(
            dimension_semantics=("parallel",)),
    )(msg_p, mem_p, w_big, b_big)
    return out[:N]


# ---------------------------------------------------------------------------
# Glue: agg_last (segment argmax over edge timestamps per destination node)
# TODO(synk): irregular segment argmax kept as fused XLA segment ops under jit;
# a scalar-prefetch Pallas version is possible but not needed at these sizes.
# ---------------------------------------------------------------------------
def aggregate_last(messages, edge_ts, dst, num_nodes):
    E = edge_ts.shape[0]
    best_ts = jax.ops.segment_max(edge_ts, dst, num_segments=num_nodes)
    eidx = jnp.arange(E, dtype=jnp.int32)
    is_best = edge_ts >= best_ts[dst]
    cand = jnp.where(is_best, eidx, jnp.int32(E))
    sel = jax.ops.segment_min(cand, dst, num_segments=num_nodes)
    has_msg = sel < E
    sel_c = jnp.minimum(sel, E - 1)
    msg_bar = jnp.where(has_msg[:, None], messages[sel_c], 0.0)
    node_ts = jnp.where(has_msg, best_ts, 0.0)
    return msg_bar, node_ts, has_msg


# ---------------------------------------------------------------------------
# Full forward of MemoryOperation (one jit so XLA fuses the remaining glue)
# ---------------------------------------------------------------------------
@jax.jit
def memory_operation_forward(params, memory, last_update_time,
                             nid, src, dst, edge_feats, edge_ts):
    # stick_feat_to_graph
    node_mem = memory[nid]                 # [N, MEM_DIM]
    node_ts = last_update_time[nid]        # [N]
    # msg_fn_cat (gathers + time encode fused into the Pallas kernel)
    messages = compute_messages(node_mem, node_ts, src, dst, edge_feats,
                                edge_ts, params["time_w"], params["time_b"])
    # agg_last
    msg_bar, new_ts, has_msg = aggregate_last(messages, edge_ts, dst,
                                              node_mem.shape[0])
    # update_memory (GRU on all graph nodes; zero message for zero-in-degree
    # nodes, matching DGL's zero-fill of reduced fields)
    new_mem = gru_update(msg_bar, node_mem, params["w_big"], params["b_big"])
    new_node_ts = jnp.where(has_msg, new_ts, node_ts)
    return new_mem, new_node_ts


def init_params(key):
    # TimeEncode (TGN): w = 1 / 10^linspace(0, 9, T), b = 0, output = cos(w*t + b)
    time_w = (1.0 / 10 ** np.linspace(0, 9, TIME_DIM)).astype(np.float32)[None, :]
    time_b = np.zeros((1, TIME_DIM), dtype=np.float32)
    # GRUCell params: uniform(-k, k), k = 1/sqrt(hidden); PyTorch gate order (r,z,n)
    D = MEM_DIM
    k = 1.0 / np.sqrt(D)
    k1, k2, k3, k4 = jax.random.split(key, 4)
    w_ih = jax.random.uniform(k1, (3 * D, MSG_DIM), jnp.float32, -k, k)
    w_hh = jax.random.uniform(k2, (3 * D, D), jnp.float32, -k, k)
    b_ih = jax.random.uniform(k3, (3 * D,), jnp.float32, -k, k)
    b_hh = jax.random.uniform(k4, (3 * D,), jnp.float32, -k, k)

    # Block weight for one fused K=160 matmul on xh = [x | h]:
    #   cols [0:64)  : W_ir/W_iz (x part) + W_hr/W_hz (h part)
    #   cols [64:96) : W_in (x part only)
    #   cols [96:128): W_hn (h part only)
    w_big = jnp.zeros((MSG_DIM + D, 4 * D), jnp.float32)
    w_big = w_big.at[:MSG_DIM, 0:3 * D].set(w_ih.T)
    w_big = w_big.at[MSG_DIM:, 0:2 * D].set(w_hh.T[:, 0:2 * D])
    w_big = w_big.at[MSG_DIM:, 3 * D:4 * D].set(w_hh.T[:, 2 * D:3 * D])
    # pre-combined biases: [b_ir+b_hr | b_iz+b_hz | b_in | b_hn]
    b_big = jnp.concatenate([b_ih[:2 * D] + b_hh[:2 * D],
                             b_ih[2 * D:], b_hh[2 * D:]])[None, :]
    return {
        "time_w": jnp.asarray(time_w),
        "time_b": jnp.asarray(time_b),
        "w_big": w_big,        # [MSG_DIM + D, 4*D] = [160, 128]
        "b_big": b_big,        # [1, 128]
    }


if __name__ == "__main__":
    key = jax.random.PRNGKey(0)
    kp, kg, km, kt, kf, ks, kd, ke = jax.random.split(key, 8)

    TOTAL_NODES = 32   # size of the memory module
    N = 16             # nodes in the positive-pair graph
    E = 64             # edges in the graph

    params = init_params(kp)

    memory = jax.random.normal(km, (TOTAL_NODES, MEM_DIM), jnp.float32)
    last_update_time = jax.random.uniform(kt, (TOTAL_NODES,), jnp.float32,
                                          0.0, 10.0)
    nid = jax.random.permutation(kg, TOTAL_NODES)[:N].astype(jnp.int32)
    src = jax.random.randint(ks, (E,), 0, N, jnp.int32)
    dst = jax.random.randint(kd, (E,), 0, N, jnp.int32)
    edge_feats = jax.random.normal(kf, (E, E_FEAT_DIM), jnp.float32)
    edge_ts = jax.random.uniform(ke, (E,), jnp.float32, 10.0, 20.0)

    new_mem, new_ts = memory_operation_forward(
        params, memory, last_update_time, nid, src, dst, edge_feats, edge_ts)
    jax.block_until_ready((new_mem, new_ts))

    assert new_mem.shape == (N, MEM_DIM)
    assert new_ts.shape == (N,)
    assert bool(jnp.all(jnp.isfinite(new_mem)))
    assert bool(jnp.all(jnp.isfinite(new_ts)))
    print("KERNEL_OK")
</pallas_src>

<mosaic_0001>
module attributes {stable_mosaic.version = 11 : i64} {
  func.func private @main(%arg0: i32) attributes {dimension_semantics = [#tpu.dimension_semantics<core_parallel>], iteration_bounds = array<i64: 2>, tpu.core_type = #tpu.core_type<sc_scalar_subcore>, window_params = []} {
    return
  }
}

module attributes {stable_mosaic.version = 11 : i64} {
  func.func private @main(%arg0: i32) attributes {dimension_semantics = [#tpu.dimension_semantics<core_parallel>], iteration_bounds = array<i64: 2>, tpu.core_type = #tpu.core_type<sc_scalar_subcore>, window_params = []} {
    return
  }
}

module attributes {stable_mosaic.version = 11 : i64} {
  func.func @message_kernel(%arg0: i32, %arg1: memref<16x32xf32, #tpu.memory_space<vmem>>, %arg2: memref<1x16xf32, #tpu.memory_space<vmem>>, %arg3: memref<64x1xi32, #tpu.memory_space<vmem>>, %arg4: memref<64x1xi32, #tpu.memory_space<vmem>>, %arg5: memref<64x32xf32, #tpu.memory_space<vmem>>, %arg6: memref<64x1xf32, #tpu.memory_space<vmem>>, %arg7: memref<1x32xf32, #tpu.memory_space<vmem>>, %arg8: memref<1x32xf32, #tpu.memory_space<vmem>>, %arg9: memref<64x128xf32, #tpu.memory_space<vmem>>) attributes {dimension_semantics = [#tpu.dimension_semantics<parallel>], iteration_bounds = array<i64: 1>, scalar_prefetch = 0 : i64, scratch_operands = 0 : i64, tpu.core_type = #tpu.core_type<tc>, window_params = [{pipeline_mode = #tpu.pipeline_mode<synchronous>, transform_indices = @transform_0, window_bounds = array<i64: 16, 32>}, {pipeline_mode = #tpu.pipeline_mode<synchronous>, transform_indices = @transform_1, window_bounds = array<i64: 1, 16>}, {transform_indices = @transform_2, window_bounds = array<i64: 64, 1>}, {transform_indices = @transform_3, window_bounds = array<i64: 64, 1>}, {transform_indices = @transform_4, window_bounds = array<i64: 64, 32>}, {transform_indices = @transform_5, window_bounds = array<i64: 64, 1>}, {pipeline_mode = #tpu.pipeline_mode<synchronous>, transform_indices = @transform_6, window_bounds = array<i64: 1, 32>}, {pipeline_mode = #tpu.pipeline_mode<synchronous>, transform_indices = @transform_7, window_bounds = array<i64: 1, 32>}, {transform_indices = @transform_8, window_bounds = array<i64: 64, 128>}]} {
    %c0 = arith.constant 0 : index
    %c0_0 = arith.constant 0 : index
    %0 = vector.load %arg1[%c0, %c0_0] : memref<16x32xf32, #tpu.memory_space<vmem>>, vector<16x32xf32>
    %c0_1 = arith.constant 0 : index
    %c0_2 = arith.constant 0 : index
    %1 = vector.load %arg2[%c0_1, %c0_2] : memref<1x16xf32, #tpu.memory_space<vmem>>, vector<1x16xf32>
    %2 = tpu.iota {dimensions = array<i32: 1>} : vector<64x16xi32>
    %c0_3 = arith.constant 0 : index
    %c0_4 = arith.constant 0 : index
    %3 = vector.load %arg3[%c0_3, %c0_4] : memref<64x1xi32, #tpu.memory_space<vmem>>, vector<64x1xi32>
    %4 = vector.broadcast %3 : vector<64x1xi32> to vector<64x16xi32>
    %5 = arith.cmpi eq, %2, %4 : vector<64x16xi32>
    %6 = arith.extui %5 : vector<64x16xi1> to vector<64x16xi32>
    %7 = arith.sitofp %6 : vector<64x16xi32> to vector<64x16xf32>
    %c0_5 = arith.constant 0 : index
    %c0_6 = arith.constant 0 : index
    %8 = vector.load %arg4[%c0_5, %c0_6] : memref<64x1xi32, #tpu.memory_space<vmem>>, vector<64x1xi32>
    %9 = vector.broadcast %8 : vector<64x1xi32> to vector<64x16xi32>
    %10 = arith.cmpi eq, %2, %9 : vector<64x16xi32>
    %11 = arith.extui %10 : vector<64x16xi1> to vector<64x16xi32>
    %12 = arith.sitofp %11 : vector<64x16xi32> to vector<64x16xf32>
    %cst = arith.constant dense<0.000000e+00> : vector<64x32xf32>
    %13 = tpu.matmul %7, %0, %cst {dimension_numbers = #tpu.dot_dimension_numbers<[1], [0], [0], [1], [0, 0, 1, 1], [], []>} : vector<64x16xf32>, vector<16x32xf32>, vector<64x32xf32> -> vector<64x32xf32>
    %cst_7 = arith.constant dense<0.000000e+00> : vector<64x32xf32>
    %14 = tpu.matmul %12, %0, %cst_7 {dimension_numbers = #tpu.dot_dimension_numbers<[1], [0], [0], [1], [0, 0, 1, 1], [], []>} : vector<64x16xf32>, vector<16x32xf32>, vector<64x32xf32> -> vector<64x32xf32>
    %15 = vector.broadcast %1 : vector<1x16xf32> to vector<64x16xf32>
    %16 = arith.mulf %7, %15 : vector<64x16xf32>
    %cst_8 = arith.constant dense<0.000000e+00> : vector<64xf32>
    %17 = vector.multi_reduction <add>, %16, %cst_8 [1] : vector<64x16xf32> to vector<64xf32>
    %18 = vector.shape_cast %17 : vector<64xf32> to vector<64x1xf32>
    %c0_9 = arith.constant 0 : index
    %c0_10 = arith.constant 0 : index
    %19 = vector.load %arg6[%c0_9, %c0_10] : memref<64x1xf32, #tpu.memory_space<vmem>>, vector<64x1xf32>
    %20 = arith.subf %19, %18 : vector<64x1xf32>
    %c0_11 = arith.constant 0 : index
    %c0_12 = arith.constant 0 : index
    %21 = vector.load %arg7[%c0_11, %c0_12] : memref<1x32xf32, #tpu.memory_space<vmem>>, vector<1x32xf32>
    %22 = vector.broadcast %20 : vector<64x1xf32> to vector<64x32xf32>
    %23 = vector.broadcast %21 : vector<1x32xf32> to vector<64x32xf32>
    %24 = arith.mulf %22, %23 : vector<64x32xf32>
    %c0_13 = arith.constant 0 : index
    %c0_14 = arith.constant 0 : index
    %25 = vector.load %arg8[%c0_13, %c0_14] : memref<1x32xf32, #tpu.memory_space<vmem>>, vector<1x32xf32>
    %26 = vector.broadcast %25 : vector<1x32xf32> to vector<64x32xf32>
    %27 = arith.addf %24, %26 : vector<64x32xf32>
    %28 = math.cos %27 : vector<64x32xf32>
    %c0_15 = arith.constant 0 : index
    %c0_16 = arith.constant 0 : index
    %29 = vector.load %arg9[%c0_15, %c0_16] : memref<64x128xf32, #tpu.memory_space<vmem>>, vector<64x32xf32>
    tpu.vector_store %arg9[%c0_15, %c0_16], %13 {strides = array<i32>} : memref<64x128xf32, #tpu.memory_space<vmem>>, vector<64x32xf32>,
    %c0_17 = arith.constant 0 : index
    %c32 = arith.constant 32 : index
    %30 = vector.load %arg9[%c0_17, %c32] : memref<64x128xf32, #tpu.memory_space<vmem>>, vector<64x32xf32>
    tpu.vector_store %arg9[%c0_17, %c32], %14 {strides = array<i32>} : memref<64x128xf32, #tpu.memory_space<vmem>>, vector<64x32xf32>,
    %c0_18 = arith.constant 0 : index
    %c0_19 = arith.constant 0 : index
    %31 = vector.load %arg5[%c0_18, %c0_19] : memref<64x32xf32, #tpu.memory_space<vmem>>, vector<64x32xf32>
    %c0_20 = arith.constant 0 : index
    %c64 = arith.constant 64 : index
    %32 = vector.load %arg9[%c0_20, %c64] : memref<64x128xf32, #tpu.memory_space<vmem>>, vector<64x32xf32>
    tpu.vector_store %arg9[%c0_20, %c64], %31 {strides = array<i32>} : memref<64x128xf32, #tpu.memory_space<vmem>>, vector<64x32xf32>,
    %c0_21 = arith.constant 0 : index
    %c96 = arith.constant 96 : index
    %33 = vector.load %arg9[%c0_21, %c96] : memref<64x128xf32, #tpu.memory_space<vmem>>, vector<64x32xf32>
    tpu.vector_store %arg9[%c0_21, %c96], %28 {strides = array<i32>} : memref<64x128xf32, #tpu.memory_space<vmem>>, vector<64x32xf32>,
    return
  }
  func.func @transform_0(%arg0: i32) -> (i32, i32) {
    %c0_i32 = arith.constant 0 : i32
    %c0_i32_0 = arith.constant 0 : i32
    %c0_i32_1 = arith.constant 0 : i32
    return %c0_i32, %c0_i32_0 : i32, i32
  }
  func.func @transform_1(%arg0: i32) -> (i32, i32) {
    %c0_i32 = arith.constant 0 : i32
    %c0_i32_0 = arith.constant 0 : i32
    %c0_i32_1 = arith.constant 0 : i32
    return %c0_i32, %c0_i32_0 : i32, i32
  }
  func.func @transform_2(%arg0: i32) -> (i32, i32) {
    %c0_i32 = arith.constant 0 : i32
    %c0_i32_0 = arith.constant 0 : i32
    return %arg0, %c0_i32 : i32, i32
  }
  func.func @transform_3(%arg0: i32) -> (i32, i32) {
    %c0_i32 = arith.constant 0 : i32
    %c0_i32_0 = arith.constant 0 : i32
    return %arg0, %c0_i32 : i32, i32
  }
  func.func @transform_4(%arg0: i32) -> (i32, i32) {
    %c0_i32 = arith.constant 0 : i32
    %c0_i32_0 = arith.constant 0 : i32
    return %arg0, %c0_i32 : i32, i32
  }
  func.func @transform_5(%arg0: i32) -> (i32, i32) {
    %c0_i32 = arith.constant 0 : i32
    %c0_i32_0 = arith.constant 0 : i32
    return %arg0, %c0_i32 : i32, i32
  }
  func.func @transform_6(%arg0: i32) -> (i32, i32) {
    %c0_i32 = arith.constant 0 : i32
    %c0_i32_0 = arith.constant 0 : i32
    %c0_i32_1 = arith.constant 0 : i32
    return %c0_i32, %c0_i32_0 : i32, i32
  }
  func.func @transform_7(%arg0: i32) -> (i32, i32) {
    %c0_i32 = arith.constant 0 : i32
    %c0_i32_0 = arith.constant 0 : i32
    %c0_i32_1 = arith.constant 0 : i32
    return %c0_i32, %c0_i32_0 : i32, i32
  }
  func.func @transform_8(%arg0: i32) -> (i32, i32) {
    %c0_i32 = arith.constant 0 : i32
    %c0_i32_0 = arith.constant 0 : i32
    return %arg0, %c0_i32 : i32, i32
  }
}

module attributes {stable_mosaic.version = 11 : i64} {
  func.func @gru_kernel(%arg0: i32, %arg1: memref<16x128xf32, #tpu.memory_space<vmem>>, %arg2: memref<16x32xf32, #tpu.memory_space<vmem>>, %arg3: memref<160x128xf32, #tpu.memory_space<vmem>>, %arg4: memref<1x128xf32, #tpu.memory_space<vmem>>, %arg5: memref<16x32xf32, #tpu.memory_space<vmem>>) attributes {dimension_semantics = [#tpu.dimension_semantics<parallel>], iteration_bounds = array<i64: 1>, scalar_prefetch = 0 : i64, scratch_operands = 0 : i64, tpu.core_type = #tpu.core_type<tc>, window_params = [{transform_indices = @transform_0, window_bounds = array<i64: 16, 128>}, {transform_indices = @transform_1, window_bounds = array<i64: 16, 32>}, {pipeline_mode = #tpu.pipeline_mode<synchronous>, transform_indices = @transform_2, window_bounds = array<i64: 160, 128>}, {pipeline_mode = #tpu.pipeline_mode<synchronous>, transform_indices = @transform_3, window_bounds = array<i64: 1, 128>}, {transform_indices = @transform_4, window_bounds = array<i64: 16, 32>}]} {
    %c0 = arith.constant 0 : index
    %c0_0 = arith.constant 0 : index
    %0 = vector.load %arg1[%c0, %c0_0] : memref<16x128xf32, #tpu.memory_space<vmem>>, vector<16x128xf32>
    %c0_1 = arith.constant 0 : index
    %c0_2 = arith.constant 0 : index
    %1 = vector.load %arg2[%c0_1, %c0_2] : memref<16x32xf32, #tpu.memory_space<vmem>>, vector<16x32xf32>
    %2 = tpu.concatenate %0, %1 in 1 : vector<16x128xf32>, vector<16x32xf32> -> vector<16x160xf32>
    %c0_3 = arith.constant 0 : index
    %c0_4 = arith.constant 0 : index
    %3 = vector.load %arg3[%c0_3, %c0_4] : memref<160x128xf32, #tpu.memory_space<vmem>>, vector<160x128xf32>
    %cst = arith.constant dense<0.000000e+00> : vector<16x128xf32>
    %4 = tpu.matmul %2, %3, %cst {dimension_numbers = #tpu.dot_dimension_numbers<[1], [0], [0], [1], [0, 0, 1, 1], [], []>} : vector<16x160xf32>, vector<160x128xf32>, vector<16x128xf32> -> vector<16x128xf32>
    %c0_5 = arith.constant 0 : index
    %c0_6 = arith.constant 0 : index
    %5 = vector.load %arg4[%c0_5, %c0_6] : memref<1x128xf32, #tpu.memory_space<vmem>>, vector<1x128xf32>
    %6 = vector.broadcast %5 : vector<1x128xf32> to vector<16x128xf32>
    %7 = arith.addf %4, %6 : vector<16x128xf32>
    %8 = vector.extract_strided_slice %7 {offsets = [0, 0], sizes = [16, 32], strides = [1, 1]} : vector<16x128xf32> to vector<16x32xf32>
    %9 = arith.negf %8 : vector<16x32xf32>
    %10 = math.exp %9 : vector<16x32xf32>
    %cst_7 = arith.constant 1.000000e+00 : f32
    %11 = vector.broadcast %cst_7 : f32 to vector<16x32xf32>
    %12 = arith.addf %11, %10 : vector<16x32xf32>
    %13 = arith.divf %11, %12 : vector<16x32xf32>
    %14 = vector.extract_strided_slice %7 {offsets = [0, 32], sizes = [16, 32], strides = [1, 1]} : vector<16x128xf32> to vector<16x32xf32>
    %15 = arith.negf %14 : vector<16x32xf32>
    %16 = math.exp %15 : vector<16x32xf32>
    %cst_8 = arith.constant 1.000000e+00 : f32
    %17 = vector.broadcast %cst_8 : f32 to vector<16x32xf32>
    %18 = arith.addf %17, %16 : vector<16x32xf32>
    %19 = arith.divf %17, %18 : vector<16x32xf32>
    %20 = vector.extract_strided_slice %7 {offsets = [0, 64], sizes = [16, 32], strides = [1, 1]} : vector<16x128xf32> to vector<16x32xf32>
    %21 = vector.extract_strided_slice %7 {offsets = [0, 96], sizes = [16, 32], strides = [1, 1]} : vector<16x128xf32> to vector<16x32xf32>
    %22 = arith.mulf %13, %21 : vector<16x32xf32>
    %23 = arith.addf %20, %22 : vector<16x32xf32>
    %24 = math.tanh %23 : vector<16x32xf32>
    %cst_9 = arith.constant 1.000000e+00 : f32
    %25 = vector.broadcast %cst_9 : f32 to vector<16x32xf32>
    %26 = arith.subf %25, %19 : vector<16x32xf32>
    %27 = arith.mulf %26, %24 : vector<16x32xf32>
    %28 = arith.mulf %19, %1 : vector<16x32xf32>
    %29 = arith.addf %27, %28 : vector<16x32xf32>
    %c0_10 = arith.constant 0 : index
    %c0_11 = arith.constant 0 : index
    %30 = vector.load %arg5[%c0_10, %c0_11] : memref<16x32xf32, #tpu.memory_space<vmem>>, vector<16x32xf32>
    tpu.vector_store %arg5[%c0_10, %c0_11], %29 {strides = array<i32>} : memref<16x32xf32, #tpu.memory_space<vmem>>, vector<16x32xf32>,
    return
  }
  func.func @transform_0(%arg0: i32) -> (i32, i32) {
    %c0_i32 = arith.constant 0 : i32
    %c0_i32_0 = arith.constant 0 : i32
    return %arg0, %c0_i32 : i32, i32
  }
  func.func @transform_1(%arg0: i32) -> (i32, i32) {
    %c0_i32 = arith.constant 0 : i32
    %c0_i32_0 = arith.constant 0 : i32
    return %arg0, %c0_i32 : i32, i32
  }
  func.func @transform_2(%arg0: i32) -> (i32, i32) {
    %c0_i32 = arith.constant 0 : i32
    %c0_i32_0 = arith.constant 0 : i32
    %c0_i32_1 = arith.constant 0 : i32
    return %c0_i32, %c0_i32_0 : i32, i32
  }
  func.func @transform_3(%arg0: i32) -> (i32, i32) {
    %c0_i32 = arith.constant 0 : i32
    %c0_i32_0 = arith.constant 0 : i32
    %c0_i32_1 = arith.constant 0 : i32
    return %c0_i32, %c0_i32_0 : i32, i32
  }
  func.func @transform_4(%arg0: i32) -> (i32, i32) {
    %c0_i32 = arith.constant 0 : i32
    %c0_i32_0 = arith.constant 0 : i32
    return %arg0, %c0_i32 : i32, i32
  }
}

</mosaic_0001>

<bundles_post_ra>
// kernel: memory_operation_forward.3
= control target key start
LH: loop header
LB: loop body
LE: loop exit
PB: predicated region body
PF: predicated region fallthrough
CT: control target
= control target key end

     0   :  { %v299_v1 = vmov 0.0   ;;  %s457_s0 = inlined_call_operand.vmem [shape: f32[16,128], index: 0, kind: input, shape index: {}]   ;;  %s458_s1 = inlined_call_operand.vmem [shape: f32[16,32], index: 1, kind: input, shape index: {}]   ;;  %s459_s2 = inlined_call_operand.vmem [shape: f32[160,128], index: 2, kind: input, shape index: {}]   ;;  %s460_s3 = inlined_call_operand.vmem [shape: f32[1,128], index: 3, kind: input, shape index: {}]   ;;  %s461_s4 = inlined_call_operand.hbm [shape: f32[16,32], index: 4, kind: output, shape index: {}]  }
   0x1   :  { %v37_v0 = vld [vmem:[%s459_s2 + $0x78] sm:$0xff]  ;;  %56 = vmatprep.subr.mxu0 %v299_v1  ;;  %218 = vmatprep.subr.mxu1 %v299_v1  ;;  %v36_v2 = vld [vmem:[%s459_s2 + $0x70] sm:$0xff]  ;;  %v35_v3 = vld [vmem:[%s459_s2 + $0x68] sm:$0xff] }
   0x2   :  { %57 = vmatpush1.msra.mxu0 %v37_v0  ;;  %238 = vmatpush1.msra.mxu1 %v37_v0  ;;  %v34_v4 = vld [vmem:[%s459_s2 + $0x60] sm:$0xff]  ;;  %v33_v5 = vld [vmem:[%s459_s2 + $0x58] sm:$0xff] }
   0x3   :  { %58 = vmatprep.subr.mxu0 %v299_v1  ;;  %219 = vmatprep.subr.mxu1 %v299_v1 }
   0x4   :  { %59 = vmatpush1.msra.mxu0 %v36_v2  ;;  %239 = vmatpush1.msra.mxu1 %v36_v2 }
   0x5   :  { %60 = vmatprep.subr.mxu0 %v299_v1  ;;  %220 = vmatprep.subr.mxu1 %v299_v1 }
   0x6   :  { %61 = vmatpush1.msra.mxu0 %v35_v3  ;;  %240 = vmatpush1.msra.mxu1 %v35_v3 }
   0x7   :  { %62 = vmatprep.subr.mxu0 %v299_v1  ;;  %221 = vmatprep.subr.mxu1 %v299_v1 }
   0x8   :  { %63 = vmatpush1.msra.mxu0 %v34_v4  ;;  %241 = vmatpush1.msra.mxu1 %v34_v4 }
   0x9   :  { %9 = vsyncpa [#allocation3], 0  ;;  %64 = vmatprep.subr.mxu0 %v299_v1  ;;  %222 = vmatprep.subr.mxu1 %v299_v1  ;;  %v32_v6 = vld [vmem:[%s459_s2 + $0x50] sm:$0xff]  ;;  %v31_v7 = vld [vmem:[%s459_s2 + $0x48] sm:$0xff]  ;;  %vm49_vm0 = vcmask 261120   ;;  %s303_s12 = smov [#allocation2]  }
   0xa   :  { %65 = vmatpush1.msra.mxu0 %v33_v5  ;;  %242 = vmatpush1.msra.mxu1 %v33_v5  ;;  %v30_v8 = vld [vmem:[%s459_s2 + $0x40] sm:$0xff]  ;;  %v29_v9 = vld [vmem:[%s459_s2 + $0x38] sm:$0xff]  ;;  %v28_v10 = vld [vmem:[%s459_s2 + $0x30] sm:$0xff]  ;;  %s202_s13 = sshll.u32 %s303_s12, 4  ;;  %s203_s13 = int_to_ptr.vmem [resolvable:$true] %s202_s13 }
   0xb   :  { %66 = vmatprep.subr.mxu0 %v299_v1  ;;  %223 = vmatprep.subr.mxu1 %v299_v1  ;;  %v27_v11 = vld [vmem:[%s459_s2 + $0x28] sm:$0xff]  ;;  %v26_v12 = vld [vmem:[%s459_s2 + $0x20] sm:$0xff]  ;;  %v25_v13 = vld [vmem:[%s459_s2 + $0x18] sm:$0xff]  ;;  %s277_s14 = scalar_lea.vmem %s203_s13, 256  ;;  %p282_p1 = scmp.lt.s32.totalorder %s203_s13, %s203_s13 }
   0xc   :  { %67 = vmatpush1.msra.mxu0 %v32_v6  ;;  %243 = vmatpush1.msra.mxu1 %v32_v6  ;;  %v24_v14 = vld [vmem:[%s459_s2 + $0x10] sm:$0xff]  ;;  %v23_v15 = vld [vmem:[%s459_s2 + $0x8] sm:$0xff]  ;;  %v22_v16 = vld [vmem:[%s459_s2] sm:$0xff]  ;;  %p278_p0 = scmp.ne.s32.totalorder %s203_s13, %s277_s14  ;;  %p283_p2 = scmp.lt.s32.totalorder %s277_s14, %s277_s14 }
   0xd   :  { %68 = vmatprep.subr.mxu0 %v299_v1  ;;  %224 = vmatprep.subr.mxu1 %v299_v1  ;;  %v41_v17 = vld [vmem:[%s459_s2 + $0x98] sm:$0xff]  ;;  %v40_v18 = vld [vmem:[%s459_s2 + $0x90] sm:$0xff]  ;;  %v39_v19 = vld [vmem:[%s459_s2 + $0x88] sm:$0xff] }
   0xe   :  { %69 = vmatpush1.msra.mxu0 %v31_v7  ;;  %244 = vmatpush1.msra.mxu1 %v31_v7  ;;  %v20_v20 = vld [vmem:[%s458_s1] sm:$0xff]  ;;  %v21_v23 = vld [vmem:[%s458_s1 + $0x8] sm:$0xff]  ;;  %s300_s1 = smov 32   ;;  %p284_p3 = por %p283_p2, %p282_p1 }
   0xf   :  { %70 = vmatprep.subr.mxu0 %v299_v1  ;;  %225 = vmatprep.subr.mxu1 %v299_v1  ;;  %v38_v21 = vld [vmem:[%s459_s2 + $0x80] sm:$0xff]  ;;  %v19_v24 = vld [vmem:[%s457_s0 + $0x8] sm:$0xff] }
  0x10   :  { %71 = vmatpush1.msra.mxu0 %v30_v8  ;;  %245 = vmatpush1.msra.mxu1 %v30_v8  ;;  %v18_v22 = vld [vmem:[%s457_s0] sm:$0xff]  ;;  %s301_s0 = smov 64   ;;  %p285_p4 = pnand %p284_p3, %p278_p0 }
  0x11   :  { %72 = vmatprep.subr.mxu0 %v299_v1  ;;  %226 = vmatprep.subr.mxu1 %v299_v1  ;;  %v213_v25 = vld [vmem:[%s460_s3] ss:$0 sm:$0xff]  ;;  %s302_s3 = smov 96  }
  0x12   :  { %73 = vmatpush1.msra.mxu0 %v29_v9  ;;  %246 = vmatpush1.msra.mxu1 %v29_v9 }
  0x13   :  { %74 = vmatprep.subr.mxu0 %v299_v1  ;;  %227 = vmatprep.subr.mxu1 %v299_v1 }
  0x14   :  { %75 = vmatpush1.msra.mxu0 %v28_v10  ;;  %247 = vmatpush1.msra.mxu1 %v28_v10 }
  0x15   :  { %76 = vmatprep.subr.mxu0 %v299_v1  ;;  %228 = vmatprep.subr.mxu1 %v299_v1 }
  0x16   :  { %77 = vmatpush1.msra.mxu0 %v27_v11  ;;  %248 = vmatpush1.msra.mxu1 %v27_v11 }
  0x17   :  { %78 = vmatprep.subr.mxu0 %v299_v1  ;;  %229 = vmatprep.subr.mxu1 %v299_v1 }
  0x18   :  { %79 = vmatpush1.msra.mxu0 %v26_v12  ;;  %249 = vmatpush1.msra.mxu1 %v26_v12 }
  0x19   :  { %80 = vmatprep.subr.mxu0 %v299_v1  ;;  %230 = vmatprep.subr.mxu1 %v299_v1 }
  0x1a   :  { %81 = vmatpush1.msra.mxu0 %v25_v13  ;;  %250 = vmatpush1.msra.mxu1 %v25_v13 }
  0x1b   :  { %82 = vmatprep.subr.mxu0 %v299_v1  ;;  %231 = vmatprep.subr.mxu1 %v299_v1 }
  0x1c   :  { %83 = vmatpush1.msra.mxu0 %v24_v14  ;;  %251 = vmatpush1.msra.mxu1 %v24_v14 }
  0x1d   :  { %84 = vmatprep.subr.mxu0 %v299_v1  ;;  %232 = vmatprep.subr.mxu1 %v299_v1 }
  0x1e   :  { %85 = vmatpush1.msra.mxu0 %v23_v15  ;;  %252 = vmatpush1.msra.mxu1 %v23_v15 }
  0x1f   :  { %86 = vmatprep.subr.mxu0 %v299_v1  ;;  %233 = vmatprep.subr.mxu1 %v299_v1 }
  0x20   :  { %87 = vmatpush1.msra.mxu0 %v22_v16  ;;  %253 = vmatpush1.msra.mxu1 %v22_v16 }
  0x21   :  { %112 = vmatprep.subr.mxu0 %v299_v1  ;;  %234 = vmatprep.subr.mxu1 %v299_v1 }
  0x22   :  { %113 = vmatpush2.msra.mxu0 %v41_v17  ;;  %254 = vmatpush2.msra.mxu1 %v41_v17 }
  0x23   :  { %114 = vmatprep.subr.mxu0 %v299_v1  ;;  %235 = vmatprep.subr.mxu1 %v299_v1 }
  0x24   :  { %115 = vmatpush2.msra.mxu0 %v40_v18  ;;  %255 = vmatpush2.msra.mxu1 %v40_v18 }
  0x25   :  { %116 = vmatprep.subr.mxu0 %v299_v1  ;;  %236 = vmatprep.subr.mxu1 %v299_v1 }
  0x26   :  { %117 = vmatpush2.msra.mxu0 %v39_v19  ;;  %256 = vmatpush2.msra.mxu1 %v39_v19 }
  0x27   :  { %118 = vmatprep.subr.mxu0 %v299_v1  ;;  %214 = vmatprep.mubr.msk.f32.mxu0 %vm49_vm0, %v20_v20 }
  0x28   :  { %119 = vmatpush2.msra.mxu0 %v38_v21  ;;  %237 = vmatprep.subr.mxu1 %v299_v1 }
  0x29   :  { %121 = vmatmul.mubr.f32.vlgmr.msra.gmra.mxu0 %v18_v22  ;;  %257 = vmatpush2.msra.mxu1 %v38_v21 }
  0x2a   :  { %215 = vmatprep.mubr.msk.f32.mxu1 %vm49_vm0, %v21_v23 }
  0x2b   :  { %126 = vmatmul.mubr.f32.vlgmr.msra.gmra.mxu1 %v19_v24 }
  0xe9   :  { %v122_v26 = vpop.f32.mrf.mxu0 }
  0xea   :  { %v123_v27 = vadd.f32 %v213_v25, %v122_v26 }
  0xeb   :  { %v124_v28 = vpop.f32.mrf.mxu0  ;;  %v127_v29 = vpop.f32.mrf.mxu1 }
  0xec   :  { %v128_v30 = vadd.f32 %v213_v25, %v127_v29  ;;  %145 = vrot.lane.b32.xlu0 %v123_v27, %s300_s1  ;;  %v216_v32 = vmul.f32 -1.442695, %v123_v27 }
  0xed   :  { %v129_v31 = vpop.f32.mrf.mxu1 }
  0xee   :  { %265 = vpow2.f32 %v216_v32  ;;  %v217_v33 = vmul.f32 -1.442695, %v128_v30 }
  0xf0   :  { %147 = vrot.lane.b32.xlu0 %v128_v30, %s300_s1  ;;  %267 = vpow2.f32 %v217_v33 }
  0xfb   :  { %v266_v34 = vpop.eup %265 }
  0xfc   :  { %v137_v35 = vadd.f32 1.0, %v266_v34 }
  0xfd   :  { %v268_v36 = vpop.eup %267 }
  0xfe   :  { %269 = vrcp.f32 %v137_v35  ;;  %v138_v37 = vadd.f32 1.0, %v268_v36 }
 0x100   :  { %271 = vrcp.f32 %v138_v37 }
 0x10b   :  { %v270_v38 = vpop.eup %269 }
 0x10c   :  { %v165_v51 = vsub.f32 1.0, %v270_v38 }
 0x10d   :  { %v272_v41 = vpop.eup %271 }
 0x10e   :  { %v166_v57 = vsub.f32 1.0, %v272_v41 }
 0x15e   :  { %v146_v39 = vpop.permute.xlu0 %145 }
 0x15f   :  { %v151_v40 = vmul.f32 %v270_v38, %v146_v39 }
 0x161   :  { %155 = vrot.lane.b32.xlu1 %v151_v40, %s301_s0 }
 0x162   :  { %v148_v42 = vpop.permute.xlu0 %147 }
 0x163   :  { %v152_v43 = vmul.f32 %v272_v41, %v148_v42 }
 0x165   :  { %157 = vrot.lane.b32.xlu1 %v152_v43, %s301_s0 }
 0x1d3   :  { %v156_v44 = vpop.permute.xlu1 %155 }
 0x1d4   :  { %v161_v45 = vadd.f32 %v156_v44, %v123_v27 }
 0x1d6   :  { %273 = vtanh.f32 %v161_v45 }
 0x1d7   :  { %v158_v46 = vpop.permute.xlu1 %157 }
 0x1d8   :  { %v162_v47 = vadd.f32 %v158_v46, %v128_v30 }
 0x1da   :  { %275 = vtanh.f32 %v162_v47 }
 0x1e3   :  { %v274_v48 = vpop.eup %273 }
 0x1e4   :  { %169 = vrot.lane.b32.xlu0 %v274_v48, %s302_s3 }
 0x1e7   :  { %v276_v49 = vpop.eup %275 }
 0x1e8   :  { %177 = vrot.lane.b32.xlu0 %v20_v20, %s300_s1  ;;  %171 = vrot.lane.b32.xlu1 %v276_v49, %s302_s3 }
 0x1ec   :  { %179 = vrot.lane.b32.xlu1 %v21_v23, %s300_s1 }
 0x256   :  { %v170_v50 = vpop.permute.xlu0 %169 }
 0x257   :  { %v175_v54 = vmul.f32 %v170_v50, %v165_v51 }
 0x25a   :  { %v178_v52 = vpop.permute.xlu0 %177  ;;  %v172_v53 = vpop.permute.xlu1 %171 }
 0x25b   :  { %v183_v55 = vmul.f32 %v270_v38, %v178_v52  ;;  %v176_v59 = vmul.f32 %v172_v53, %v166_v57 }
 0x25d   :  { %v185_v56 = vadd.f32 %v183_v55, %v175_v54 }
 0x25e   :  { %v180_v58 = vpop.permute.xlu1 %179 }
 0x25f   :  { %v184_v60 = vmul.f32 %v272_v41, %v180_v58  ;;  %189 = vrot.lane.b32.xlu0 %v185_v56, %s302_s3 }
 0x261   :  { %v186_v61 = vadd.f32 %v184_v60, %v176_v59 }
 0x263   :  { %191 = vrot.lane.b32.xlu1 %v186_v61, %s302_s3 }
 0x2d1   :  { %v190_v62 = vpop.permute.xlu0 %189 }
 0x2d2   :  { %195 = vst.msk [vmem:[#allocation2] sm:$0xff] %vm49_vm0, %v190_v62 }
 0x2d5   :  { %v192_v63 = vpop.permute.xlu1 %191 }
 0x2d6   :  { %196 = vst.msk [vmem:[#allocation2 + $0x8] sm:$0xff] %vm49_vm0, %v192_v63 }
 0x2d7   :  { %288 = shalt.err (!%p285_p4)
}
 0x2d8   :  { %s304_s15 = smov 128   ;;  %s305_s16 = smov 8  }
 0x2d9   :  { %208 = dma.vmem_to_hbm [thread:$0]  %s203_s13, 256, %s461_s4, [#allocation3], %s304_s15, %s304_s15, %s305_s16  }
 0x2da   :  { %297 = dma.done.wait [#allocation3], 256  }
 0x2db   :  { %298 = vsyncadd [#allocation3], 4294967040 }
 0x2dc   :  { %212 = vsyncpa [#allocation3], 1 }

// kernel: memory_operation_forward.2
= control target key start
LH: loop header
LB: loop body
LE: loop exit
PB: predicated region body
PF: predicated region fallthrough
CT: control target
= control target key end

     0   :  { %v1693_v0 = vmov 0   ;;  %v32_v19 = vlaneseq  ;;  %vm146_vm0 = vcmask 130048   ;;  %v1694_v24 = vmov 0.0   ;;  %s1695_s11 = smov 64   ;;  %s1696_s12 = smov 32   ;;  %s2922_s2 = inlined_call_operand.vmem [shape: s32[64,1], index: 2, kind: input, shape index: {}]   ;;  %s2923_s0 = inlined_call_operand.vmem [shape: f32[16,32], index: 0, kind: input, shape index: {}]   ;;  %s2924_s3 = inlined_call_operand.vmem [shape: s32[64,1], index: 3, kind: input, shape index: {}]   ;;  %s2925_s1 = inlined_call_operand.vmem [shape: f32[1,16], index: 1, kind: input, shape index: {}]   ;;  %s2926_s5 = inlined_call_operand.vmem [shape: f32[64,1], index: 5, kind: input, shape index: {}]   ;;  %s2927_s4 = inlined_call_operand.vmem [shape: f32[64,32], index: 4, kind: input, shape index: {}]   ;;  %s2928_s8 = inlined_call_operand.vmem [shape: f32[64,128], index: 8, kind: output, shape index: {}]   ;;  %s2929_s6 = inlined_call_operand.vmem [shape: f32[1,32], index: 6, kind: input, shape index: {}]   ;;  %s2930_s7 = inlined_call_operand.vmem [shape: f32[1,32], index: 7, kind: input, shape index: {}]  }
   0x1   :  { %1660 = vset.pattern.permute.xlu1 %v1693_v0  ;;  %1659 = vset.pattern.permute.xlu0 %v1693_v0  ;;  %v36_v1 = vld [vmem:[%s2922_s2 + $0x10] sm:$0xff]  ;;  %v34_v2 = vld [vmem:[%s2922_s2] sm:$0xff]  ;;  %v37_v3 = vld [vmem:[%s2922_s2 + $0x18] sm:$0xff]  ;;  %s1703_s28 = smov 96  }
   0x2   :  { %49 = vperm.xlu1 %1660, %v36_v1   ;;  %43 = vperm.xlu0 %1659, %v34_v2   ;;  %v35_v4 = vld [vmem:[%s2922_s2 + $0x8] sm:$0xff]  ;;  %v38_v7 = vld [vmem:[%s2922_s2 + $0x20] sm:$0xff]  ;;  %v41_v9 = vld [vmem:[%s2922_s2 + $0x38] sm:$0xff]  ;;  %v1803_v20 = vand.u32 127, %v32_v19 }
   0x3   :  { %v30_v5 = vld [vmem:[%s2923_s0 + $0x8] sm:$0xff]  ;;  %v29_v8 = vld [vmem:[%s2923_s0] sm:$0xff]  ;;  %v40_v10 = vld [vmem:[%s2922_s2 + $0x30] sm:$0xff] }
   0x4   :  { %v39_v6 = vld [vmem:[%s2922_s2 + $0x28] sm:$0xff]  ;;  %1584 = vmatprep.subr.mxu0 %v30_v5  ;;  %1600 = vmatprep.subr.mxu1 %v30_v5  ;;  %v90_v12 = vld [vmem:[%s2924_s3] sm:$0xff]  ;;  %v93_v13 = vld [vmem:[%s2924_s3 + $0x18] sm:$0xff] }
   0x5   :  { %1585 = vmatpush3.msra.mxu0 %v30_v5  ;;  %1601 = vmatpush3.msra.mxu1 %v30_v5  ;;  %v91_v11 = vld [vmem:[%s2924_s3 + $0x8] sm:$0xff]  ;;  %v92_v14 = vld [vmem:[%s2924_s3 + $0x10] sm:$0xff]  ;;  %v94_v16 = vld [vmem:[%s2924_s3 + $0x20] sm:$0xff] }
   0x6   :  { %52 = vperm.xlu1 %1660, %v37_v3   ;;  %46 = vperm.xlu0 %1659, %v35_v4   ;;  %v95_v15 = vld [vmem:[%s2924_s3 + $0x28] sm:$0xff]  ;;  %v97_v17 = vld [vmem:[%s2924_s3 + $0x38] sm:$0xff]  ;;  %v96_v18 = vld [vmem:[%s2924_s3 + $0x30] sm:$0xff] }
   0x7   :  { %1586 = vmatprep.subr.mxu0 %v29_v8  ;;  %1602 = vmatprep.subr.mxu1 %v29_v8  ;;  %v1529_v23 = vld [vmem:[%s2925_s1] ss:$0 sm:$0xff] }
   0x8   :  { %1587 = vmatpush3.msra.mxu0 %v29_v8  ;;  %1603 = vmatpush3.msra.mxu1 %v29_v8 }
   0xa   :  { %58 = vperm.xlu1 %1660, %v39_v6   ;;  %55 = vperm.xlu0 %1659, %v38_v7   ;;  %v443_v7 = vld [vmem:[%s2926_s5] sm:$0xff] }
   0xe   :  { %64 = vperm.xlu1 %1660, %v41_v9   ;;  %61 = vperm.xlu0 %1659, %v40_v10   ;;  %v444_v10 = vld [vmem:[%s2926_s5 + $0x8] sm:$0xff] }
  0x12   :  { %102 = vperm.xlu1 %1660, %v91_v11   ;;  %99 = vperm.xlu0 %1659, %v90_v12   ;;  %v445_v11 = vld [vmem:[%s2926_s5 + $0x10] sm:$0xff] }
  0x16   :  { %108 = vperm.xlu1 %1660, %v93_v13   ;;  %105 = vperm.xlu0 %1659, %v92_v14  }
  0x1a   :  { %114 = vperm.xlu1 %1660, %v95_v15   ;;  %111 = vperm.xlu0 %1659, %v94_v16   ;;  %v447_v16 = vld [vmem:[%s2926_s5 + $0x20] sm:$0xff] }
  0x1e   :  { %120 = vperm.xlu1 %1660, %v97_v17   ;;  %117 = vperm.xlu0 %1659, %v96_v18   ;;  %v446_v17 = vld [vmem:[%s2926_s5 + $0x18] sm:$0xff] }
  0x7d   :  { %v50_v21 = vpop.permute.xlu1 %49  ;;  %v44_v22 = vpop.permute.xlu0 %43 }
  0x7e   :  { %vm68_vm1 = vcmp.eq.s32.totalorder %v1803_v20, %v50_v21  ;;  %vm66_vm2 = vcmp.eq.s32.totalorder %v1803_v20, %v44_v22  ;;  %v449_v22 = vld [vmem:[%s2926_s5 + $0x30] sm:$0xff] }
  0x7f   :  { %v1499_v25 = vsel %vm68_vm1, 1.0, %v1694_v24  ;;  %v1497_v26 = vsel %vm66_vm2, 1.0, %v1694_v24 }
  0x80   :  { %1588 = vmatprep.mubr.msk.f32.mxu0 %vm146_vm0, %v1497_v26  ;;  %v411_v27 = vmul.f32 %v1529_v23, %v1497_v26  ;;  %v413_v28 = vmul.f32 %v1529_v23, %v1499_v25 }
  0x81   :  { %v53_v29 = vpop.permute.xlu1 %52  ;;  %v47_v30 = vpop.permute.xlu0 %46 }
  0x82   :  { %vm69_vm3 = vcmp.eq.s32.totalorder %v1803_v20, %v53_v29  ;;  %vm67_vm4 = vcmp.eq.s32.totalorder %v1803_v20, %v47_v30  ;;  %v419_v31 = vsel %vm146_vm0, %v411_v27, 0.0  ;;  %v425_v35 = vsel %vm146_vm0, %v413_v28, 0.0  ;;  %v450_v28 = vld [vmem:[%s2926_s5 + $0x38] sm:$0xff]  ;;  %v1403_v30 = vld [vmem:[%s2927_s4] sm:$0xff] }
  0x83   :  { %v1500_v32 = vsel %vm69_vm3, 1.0, %v1694_v24  ;;  %v1498_v33 = vsel %vm67_vm4, 1.0, %v1694_v24  ;;  %420 = vadd.xlane.f32.xlu0 %v419_v31 }
  0x84   :  { %1589 = vmatmul.mubr.msk.f32.vlgmr.msra.gmra.mxu0 %vm146_vm0, %v1498_v33  ;;  %v412_v34 = vmul.f32 %v1529_v23, %v1498_v33  ;;  %v414_v39 = vmul.f32 %v1529_v23, %v1500_v32  ;;  %v1405_v33 = vld [vmem:[%s2927_s4 + $0x10] sm:$0xff] }
  0x85   :  { %v59_v36 = vpop.permute.xlu1 %58  ;;  %v56_v37 = vpop.permute.xlu0 %55  ;;  %1591 = vmatprep.mubr.msk.f32.mxu0 %vm146_vm0, %v1499_v25 }
  0x86   :  { %vm71_vm5 = vcmp.eq.s32.totalorder %v1803_v20, %v59_v36  ;;  %vm70_vm6 = vcmp.eq.s32.totalorder %v1803_v20, %v56_v37  ;;  %v422_v38 = vsel %vm146_vm0, %v412_v34, 0.0  ;;  %v428_v47 = vsel %vm146_vm0, %v414_v39, 0.0  ;;  %v1406_v34 = vld [vmem:[%s2927_s4 + $0x18] sm:$0xff]  ;;  %v1408_v36 = vld [vmem:[%s2927_s4 + $0x28] sm:$0xff]  ;;  %v1409_v37 = vld [vmem:[%s2927_s4 + $0x30] sm:$0xff] }
  0x87   :  { %v1502_v40 = vsel %vm71_vm5, 1.0, %v1694_v24  ;;  %v1501_v41 = vsel %vm70_vm6, 1.0, %v1694_v24  ;;  %423 = vadd.xlane.f32.xlu1 %v422_v38  ;;  %426 = vadd.xlane.f32.xlu0 %v425_v35  ;;  %v1407_v35 = vld [vmem:[%s2927_s4 + $0x20] sm:$0xff]  ;;  %v1410_v38 = vld [vmem:[%s2927_s4 + $0x38] sm:$0xff] }
  0x88   :  { %1592 = vmatmul.mubr.msk.f32.gmra.mxu0 %vm146_vm0, %v1500_v32  ;;  %v415_v42 = vmul.f32 %v1529_v23, %v1501_v41  ;;  %v416_v45 = vmul.f32 %v1529_v23, %v1502_v40  ;;  %v1404_v32 = vld [vmem:[%s2927_s4 + $0x8] sm:$0xff] }
  0x89   :  { %v65_v43 = vpop.permute.xlu1 %64  ;;  %v62_v44 = vpop.permute.xlu0 %61  ;;  %1594 = vmatprep.mubr.msk.f32.mxu0 %vm146_vm0, %v1501_v41 }
  0x8a   :  { %vm73_vm7 = vcmp.eq.s32.totalorder %v1803_v20, %v65_v43  ;;  %vm72_vm8 = vcmp.eq.s32.totalorder %v1803_v20, %v62_v44  ;;  %v431_v46 = vsel %vm146_vm0, %v415_v42, 0.0  ;;  %v434_v53 = vsel %vm146_vm0, %v416_v45, 0.0 }
  0x8b   :  { %v1504_v48 = vsel %vm73_vm7, 1.0, %v1694_v24  ;;  %v1503_v49 = vsel %vm72_vm8, 1.0, %v1694_v24  ;;  %432 = vadd.xlane.f32.xlu1 %v431_v46  ;;  %429 = vadd.xlane.f32.xlu0 %v428_v47 }
  0x8c   :  { %1595 = vmatmul.mubr.msk.f32.gmra.mxu0 %vm146_vm0, %v1502_v40  ;;  %v417_v50 = vmul.f32 %v1529_v23, %v1503_v49  ;;  %v418_v55 = vmul.f32 %v1529_v23, %v1504_v48  ;;  %v448_v23 = vld [vmem:[%s2926_s5 + $0x28] sm:$0xff] }
  0x8d   :  { %v103_v51 = vpop.permute.xlu1 %102  ;;  %v100_v52 = vpop.permute.xlu0 %99  ;;  %1597 = vmatprep.mubr.msk.f32.mxu0 %vm146_vm0, %v1503_v49 }
  0x8e   :  { %vm123_vm9 = vcmp.eq.s32.totalorder %v1803_v20, %v103_v51  ;;  %vm122_vm10 = vcmp.eq.s32.totalorder %v1803_v20, %v100_v52  ;;  %v437_v54 = vsel %vm146_vm0, %v417_v50, 0.0  ;;  %v440_v60 = vsel %vm146_vm0, %v418_v55, 0.0  ;;  %v1530_v55 = vld [vmem:[%s2929_s6] ss:$0 sm:$0xff] }
  0x8f   :  { %v1506_v56 = vsel %vm123_vm9, 1.0, %v1694_v24  ;;  %438 = vadd.xlane.f32.xlu1 %v437_v54  ;;  %435 = vadd.xlane.f32.xlu0 %v434_v53  ;;  %v1505_v57 = vsel %vm122_vm10, 1.0, %v1694_v24 }
  0x90   :  { %1598 = vmatmul.mubr.msk.f32.gmra.mxu0 %vm146_vm0, %v1504_v48  ;;  %1604 = vmatprep.mubr.msk.f32.mxu1 %vm146_vm0, %v1505_v57 }
  0x91   :  { %v109_v58 = vpop.permute.xlu1 %108  ;;  %v106_v59 = vpop.permute.xlu0 %105  ;;  %1605 = vmatmul.mubr.msk.f32.vlgmr.msra.gmra.mxu1 %vm146_vm0, %v1506_v56  ;;  %v1531_v56 = vld [vmem:[%s2930_s7] ss:$0 sm:$0xff] }
  0x92   :  { %vm125_vm11 = vcmp.eq.s32.totalorder %v1803_v20, %v109_v58  ;;  %vm124_vm12 = vcmp.eq.s32.totalorder %v1803_v20, %v106_v59 }
  0x93   :  { %v1508_v61 = vsel %vm125_vm11, 1.0, %v1694_v24  ;;  %v1507_v62 = vsel %vm124_vm12, 1.0, %v1694_v24  ;;  %441 = vadd.xlane.f32.xlu0 %v440_v60 }
  0x94   :  { %1607 = vmatprep.mubr.msk.f32.mxu1 %vm146_vm0, %v1507_v62 }
  0x95   :  { %v115_v63 = vpop.permute.xlu1 %114  ;;  %v112_v0 = vpop.permute.xlu0 %111  ;;  %1608 = vmatmul.mubr.msk.f32.gmra.mxu1 %vm146_vm0, %v1508_v61 }
  0x96   :  { %vm127_vm13 = vcmp.eq.s32.totalorder %v1803_v20, %v115_v63  ;;  %vm126_vm14 = vcmp.eq.s32.totalorder %v1803_v20, %v112_v0 }
  0x97   :  { %v1510_v1 = vsel %vm127_vm13, 1.0, %v1694_v24  ;;  %v1509_v2 = vsel %vm126_vm14, 1.0, %v1694_v24 }
  0x98   :  { %1610 = vmatprep.mubr.msk.f32.mxu1 %vm146_vm0, %v1509_v2 }
  0x99   :  { %v121_v3 = vpop.permute.xlu1 %120  ;;  %v118_v4 = vpop.permute.xlu0 %117  ;;  %1611 = vmatmul.mubr.msk.f32.gmra.mxu1 %vm146_vm0, %v1510_v1 }
  0x9a   :  { %vm129_vm15 = vcmp.eq.s32.totalorder %v1803_v20, %v121_v3  ;;  %vm128_vm1 = vcmp.eq.s32.totalorder %v1803_v20, %v118_v4 }
  0x9b   :  { %v1512_v5 = vsel %vm129_vm15, 1.0, %v1694_v24  ;;  %v1511_v6 = vsel %vm128_vm1, 1.0, %v1694_v24  ;;  %vm1394_vm1 = vcmask 523520  }
  0x9c   :  { %1613 = vmatprep.mubr.msk.f32.mxu1 %vm146_vm0, %v1511_v6 }
  0x9d   :  { %1614 = vmatmul.mubr.msk.f32.gmra.mxu1 %vm146_vm0, %v1512_v5  ;;  %vm1353_vm0 = vcmask 261120  }
 0x10c   :  { %v421_v8 = vpop.xlane.xlu0 %420 }
 0x10d   :  { %v451_v9 = vsub.f32 %v443_v7, %v421_v8 }
 0x10f   :  { %462 = vperm.xlu1 %1660, %v451_v9  }
 0x110   :  { %v424_v12 = vpop.xlane.xlu1 %423  ;;  %v427_v13 = vpop.xlane.xlu0 %426 }
 0x111   :  { %v452_v14 = vsub.f32 %v444_v10, %v424_v12  ;;  %v453_v15 = vsub.f32 %v445_v11, %v427_v13 }
 0x113   :  { %467 = vperm.xlu0 %1659, %v452_v14   ;;  %472 = vperm.xlu1 %1660, %v453_v15  }
 0x114   :  { %v433_v18 = vpop.xlane.xlu1 %432  ;;  %v430_v19 = vpop.xlane.xlu0 %429 }
 0x115   :  { %v455_v20 = vsub.f32 %v447_v16, %v433_v18  ;;  %v454_v21 = vsub.f32 %v446_v17, %v430_v19 }
 0x117   :  { %482 = vperm.xlu0 %1659, %v455_v20   ;;  %477 = vperm.xlu1 %1660, %v454_v21  }
 0x118   :  { %v439_v24 = vpop.xlane.xlu1 %438  ;;  %v436_v25 = vpop.xlane.xlu0 %435 }
 0x119   :  { %v457_v26 = vsub.f32 %v449_v22, %v439_v24  ;;  %v456_v27 = vsub.f32 %v448_v23, %v436_v25 }
 0x11b   :  { %492 = vperm.xlu0 %1659, %v457_v26   ;;  %487 = vperm.xlu1 %1660, %v456_v27  }
 0x11c   :  { %v442_v29 = vpop.xlane.xlu0 %441 }
 0x11d   :  { %v458_v31 = vsub.f32 %v450_v28, %v442_v29 }
 0x11f   :  { %497 = vperm.xlu1 %1660, %v458_v31   ;;  %1419 = vrot.lane.b32.xlu0 %v1403_v30, %s1695_s11 }
 0x123   :  { %1421 = vrot.lane.b32.xlu1 %v1404_v32, %s1695_s11  ;;  %1423 = vrot.lane.b32.xlu0 %v1405_v33, %s1695_s11 }
 0x127   :  { %1425 = vrot.lane.b32.xlu1 %v1406_v34, %s1695_s11  ;;  %1427 = vrot.lane.b32.xlu0 %v1407_v35, %s1695_s11 }
 0x12b   :  { %1429 = vrot.lane.b32.xlu1 %v1408_v36, %s1695_s11  ;;  %1431 = vrot.lane.b32.xlu0 %v1409_v37, %s1695_s11 }
 0x12f   :  { %1433 = vrot.lane.b32.xlu1 %v1410_v38, %s1695_s11 }
 0x144   :  { %v1590_v39 = vpop.f32.mrf.mxu0 }
 0x145   :  { %1355 = vst.msk [vmem:[%s2928_s8 + $0x8] sm:$0xff] %vm1353_vm0, %v1590_v39 }
 0x146   :  { %v237_v40 = vpop.f32.mrf.mxu0 }
 0x147   :  { %1354 = vst.msk [vmem:[%s2928_s8] sm:$0xff] %vm1353_vm0, %v237_v40 }
 0x148   :  { %v1593_v41 = vpop.f32.mrf.mxu0 }
 0x149   :  { %1357 = vst.msk [vmem:[%s2928_s8 + $0x18] sm:$0xff] %vm1353_vm0, %v1593_v41 }
 0x14a   :  { %v247_v42 = vpop.f32.mrf.mxu0 }
 0x14b   :  { %1356 = vst.msk [vmem:[%s2928_s8 + $0x10] sm:$0xff] %vm1353_vm0, %v247_v42 }
 0x14c   :  { %v1596_v43 = vpop.f32.mrf.mxu0 }
 0x14d   :  { %1359 = vst.msk [vmem:[%s2928_s8 + $0x28] sm:$0xff] %vm1353_vm0, %v1596_v43 }
 0x14e   :  { %v257_v44 = vpop.f32.mrf.mxu0 }
 0x14f   :  { %1358 = vst.msk [vmem:[%s2928_s8 + $0x20] sm:$0xff] %vm1353_vm0, %v257_v44 }
 0x150   :  { %v1599_v45 = vpop.f32.mrf.mxu0 }
 0x151   :  { %1361 = vst.msk [vmem:[%s2928_s8 + $0x38] sm:$0xff] %vm1353_vm0, %v1599_v45  ;;  %v1606_v46 = vpop.f32.mrf.mxu1 }
 0x152   :  { %1372 = vrot.lane.b32.xlu1 %v1606_v46, %s1696_s12  ;;  %v267_v47 = vpop.f32.mrf.mxu0  ;;  %v1697_v46 = vmov 2475754826  }
 0x153   :  { %1360 = vst.msk [vmem:[%s2928_s8 + $0x30] sm:$0xff] %vm1353_vm0, %v267_v47  ;;  %v366_v48 = vpop.f32.mrf.mxu1 }
 0x154   :  { %1370 = vrot.lane.b32.xlu0 %v366_v48, %s1696_s12  ;;  %v1698_v48 = vmov 2131351028  }
 0x155   :  { %v1609_v49 = vpop.f32.mrf.mxu1 }
 0x156   :  { %1376 = vrot.lane.b32.xlu1 %v1609_v49, %s1696_s12 }
 0x157   :  { %v376_v50 = vpop.f32.mrf.mxu1 }
 0x158   :  { %1374 = vrot.lane.b32.xlu0 %v376_v50, %s1696_s12 }
 0x159   :  { %v1612_v51 = vpop.f32.mrf.mxu1 }
 0x15a   :  { %1380 = vrot.lane.b32.xlu1 %v1612_v51, %s1696_s12 }
 0x15b   :  { %v386_v52 = vpop.f32.mrf.mxu1 }
 0x15c   :  { %1378 = vrot.lane.b32.xlu0 %v386_v52, %s1696_s12 }
 0x15d   :  { %v1615_v53 = vpop.f32.mrf.mxu1 }
 0x15e   :  { %1384 = vrot.lane.b32.xlu1 %v1615_v53, %s1696_s12 }
 0x15f   :  { %v396_v54 = vpop.f32.mrf.mxu1 }
 0x160   :  { %1382 = vrot.lane.b32.xlu0 %v396_v54, %s1696_s12  ;;  %v2932_v54 = vmov 2102212464  }
 0x18a   :  { %v463_v57 = vpop.permute.xlu1 %462 }
 0x18b   :  { %v506_v58 = vmul.f32 %v1530_v55, %v463_v57  ;;  %v1700_v57 = vmov 683565275  }
 0x18d   :  { %v1950_v59 = vadd.f32 %v1531_v56, %v506_v58 }
 0x18e   :  { %v473_v60 = vpop.permute.xlu1 %472  ;;  %v468_v61 = vpop.permute.xlu0 %467 }
 0x18f   :  { %v532_v62 = vand.u32 2139095040, %v1950_v59  ;;  %v508_v63 = vmul.f32 %v1530_v55, %v473_v60  ;;  %v507_v0 = vmul.f32 %v1530_v55, %v468_v61  ;;  %v529_v18 = vand.u32 2147483647, %v1950_v59 }
 0x190   :  { %v1701_v61 = vmov 920167782  }
 0x191   :  { %v533_v1 = vshrl.u32 %v532_v62, 23  ;;  %v1953_v2 = vadd.f32 %v1531_v56, %v508_v63  ;;  %v1955_v3 = vadd.f32 %v1531_v56, %v507_v0  ;;  %v536_v32 = vand.u32 8388607, %v529_v18 }
 0x192   :  { %v478_v4 = vpop.permute.xlu1 %477  ;;  %v483_v5 = vpop.permute.xlu0 %482 }
 0x193   :  { %v1532_v6 = vadd.s32 4294967169, %v533_v1  ;;  %v738_v7 = vand.u32 2139095040, %v1953_v2  ;;  %v635_v8 = vand.u32 2139095040, %v1955_v3  ;;  %v509_v9 = vmul.f32 %v1530_v55, %v478_v4 }
 0x194   :  { %v510_v10 = vmul.f32 %v1530_v55, %v483_v5  ;;  %v537_v37 = vor.u32 8388608, %v536_v32  ;;  %v632_v40 = vand.u32 2147483647, %v1955_v3 }
 0x195   :  { %v539_v11 = vadd.s32 1, %v1532_v6  ;;  %v739_v12 = vshrl.u32 %v738_v7, 23  ;;  %v636_v13 = vshrl.u32 %v635_v8, 23  ;;  %v1959_v14 = vadd.f32 %v1531_v56, %v509_v9 }
 0x196   :  { %v1961_v15 = vadd.f32 %v1531_v56, %v510_v10  ;;  %v488_v16 = vpop.permute.xlu1 %487  ;;  %v493_v17 = vpop.permute.xlu0 %492  ;;  %v1977_v44 = vshll.u32 %v537_v37, 8  ;;  %v1983_v50 = vand.u32 8388607, %v632_v40 }
 0x197   :  { %vm540_vm2 = vcmp.gt.s32.totalorder %v539_v11, 0  ;;  %v1540_v19 = vadd.s32 4294967169, %v739_v12  ;;  %v1536_v20 = vadd.s32 4294967169, %v636_v13  ;;  %v511_v21 = vmul.f32 %v1530_v55, %v488_v16 }
 0x198   :  { %v512_v22 = vmul.f32 %v1530_v55, %v493_v17  ;;  %v841_v23 = vand.u32 2139095040, %v1959_v14  ;;  %v541_v24 = vsel %vm540_vm2, %v539_v11, 0  ;;  %v944_v28 = vand.u32 2139095040, %v1961_v15 }
 0x199   :  { %v1965_v25 = vadd.f32 %v1531_v56, %v511_v21  ;;  %v745_v30 = vadd.s32 1, %v1540_v19  ;;  %v642_v31 = vadd.s32 1, %v1536_v20  ;;  %v543_v33 = vand.u32 31, %v541_v24 }
 0x19a   :  { %v1967_v26 = vadd.f32 %v1531_v56, %v512_v22  ;;  %v498_v27 = vpop.permute.xlu1 %497  ;;  %v842_v34 = vshrl.u32 %v841_v23, 23  ;;  %v945_v35 = vshrl.u32 %v944_v28, 23  ;;  %v542_v51 = vshrl.u32 %v541_v24, 5  ;;  %v2016_v28 = vpop.permute.xlu0 %1419 }
 0x19b   :  { %v513_v29 = vmul.f32 %v1530_v55, %v498_v27  ;;  %vm746_vm3 = vcmp.gt.s32.totalorder %v745_v30, 0  ;;  %vm643_vm4 = vcmp.gt.s32.totalorder %v642_v31, 0  ;;  %v544_v38 = vsub.s32 32, %v543_v33 }
 0x19c   :  { %v1544_v39 = vadd.s32 4294967169, %v842_v34  ;;  %v1975_v41 = vsel %vm746_vm3, %v745_v30, 0  ;;  %v644_v42 = vsel %vm643_vm4, %v642_v31, 0  ;;  %v1548_v43 = vadd.s32 4294967169, %v945_v35 }
 0x19d   :  { %v1972_v36 = vadd.f32 %v1531_v56, %v513_v29  ;;  %v547_v47 = vshrl.u32 %v1697_v46, %v544_v38  ;;  %v550_v49 = vshrl.u32 %v1698_v48, %v544_v38  ;;  %v1986_v52 = vand.u32 31, %v1975_v41 }
 0x19e   :  { %v848_v45 = vadd.s32 1, %v1544_v39  ;;  %v1988_v53 = vand.u32 31, %v644_v42  ;;  %v553_v55 = vshrl.u32 %v2932_v54, %v544_v38  ;;  %v951_v56 = vadd.s32 1, %v1548_v43  ;;  %v2011_v21 = vpop.permute.xlu1 %1421 }
 0x19f   :  { %v546_v58 = vshll.u32 %v1700_v57, %v543_v33  ;;  %v549_v60 = vshll.u32 %v1697_v46, %v543_v33  ;;  %v556_v62 = vshrl.u32 %v1701_v61, %v544_v38  ;;  %v1047_v63 = vand.u32 2139095040, %v1965_v25 }
 0x1a0   :  { %v1150_v0 = vand.u32 2139095040, %v1967_v26  ;;  %v552_v1 = vshll.u32 %v1698_v48, %v543_v33  ;;  %v555_v4 = vshll.u32 %v2932_v54, %v543_v33  ;;  %v1998_v5 = vshrl.u32 %v644_v42, 5 }
 0x1a1   :  { %vm849_vm5 = vcmp.gt.s32.totalorder %v848_v45, 0  ;;  %v548_v6 = vor.u32 %v547_v47, %v546_v58  ;;  %v551_v7 = vor.u32 %v550_v49, %v549_v60  ;;  %v558_v10 = vshll.u32 %v1701_v61, %v543_v33 }
 0x1a2   :  { %v554_v8 = vor.u32 %v553_v55, %v552_v1  ;;  %v557_v9 = vor.u32 %v556_v62, %v555_v4  ;;  %v1702_v11 = vmov 1326507024   ;;  %v2003_v13 = vsub.s32 32, %v1986_v52  ;;  %v2028_v49 = vpop.permute.xlu1 %1425  ;;  %v2043_v1 = vpop.permute.xlu0 %1423 }
 0x1a3   :  { %v559_v12 = vshrl.u32 %v1702_v11, %v544_v38  ;;  %v647_v16 = vsub.s32 32, %v1988_v53  ;;  %vm952_vm6 = vcmp.gt.s32.totalorder %v951_v56, 0  ;;  %v545_v17 = vshrl.u32 %v1700_v57, %v544_v38 }
 0x1a4   :  { %v2007_v19 = vshrl.u32 %v1047_v63, 23  ;;  %v2009_v20 = vshrl.u32 %v1150_v0, 23  ;;  %vm561_vm7 = vcmp.lt.s32.totalorder %v542_v51, 1  ;;  %v2014_v23 = vsel %vm849_vm5, %v848_v45, 0 }
 0x1a5   :  { %v560_v22 = vor.u32 %v559_v12, %v558_v10  ;;  %vm564_vm8 = vcmp.lt.s32.totalorder %v542_v51, 4  ;;  %v565_v24 = vsel %vm561_vm7, %v545_v17, %v548_v6  ;;  %v569_v27 = vsel %vm561_vm7, %v548_v6, %v551_v7 }
 0x1a6   :  { %vm563_vm9 = vcmp.lt.s32.totalorder %v542_v51, 3  ;;  %v566_v29 = vsel %vm564_vm8, %v554_v8, 2102212464  ;;  %v570_v30 = vsel %vm564_vm8, %v557_v9, 920167782  ;;  %v573_v31 = vsel %vm561_vm7, %v551_v7, %v554_v8 }
 0x1a7   :  { %vm562_vm10 = vcmp.lt.s32.totalorder %v542_v51, 2  ;;  %v567_v32 = vsel %vm563_vm9, %v551_v7, %v566_v29  ;;  %v571_v33 = vsel %vm563_vm9, %v554_v8, %v570_v30  ;;  %v574_v34 = vsel %vm564_vm8, %v560_v22, 1326507024 }
 0x1a8   :  { %v2019_v35 = vsel %vm952_vm6, %v951_v56, 0  ;;  %v568_v37 = vsel %vm562_vm10, %v565_v24, %v567_v32  ;;  %v572_v38 = vsel %vm562_vm10, %v569_v27, %v571_v33  ;;  %v575_v39 = vsel %vm563_vm9, %v557_v9, %v574_v34 }
 0x1a9   :  { %v576_v42 = vsel %vm562_vm10, %v573_v31, %v575_v39  ;;  %v2022_v43 = vmul.u32.u64.low %v1977_v44, %v572_v38  ;;  %v2023_v45 = vmul.u32.u64.high %v1977_v44, %v572_v38, %v2022_v43  ;;  %v649_v47 = vshll.u32 %v1700_v57, %v1988_v53  ;;  %v2058_v31 = vpop.permute.xlu1 %1429  ;;  %v2066_v38 = vpop.permute.xlu0 %1427 }
 0x1aa   :  { %v2031_v51 = vmul.u32.u64.low %v1977_v44, %v576_v42  ;;  %v2032_v55 = vmul.u32.u64.high %v1977_v44, %v576_v42, %v2031_v51  ;;  %v650_v56 = vshrl.u32 %v1697_v46, %v647_v16  ;;  %v652_v58 = vshll.u32 %v1697_v46, %v1988_v53 }
 0x1ab   :  { %v653_v60 = vshrl.u32 %v1698_v48, %v647_v16  ;;  %v655_v62 = vshll.u32 %v1698_v48, %v1988_v53  ;;  %v656_v63 = vshrl.u32 %v2932_v54, %v647_v16  ;;  %v658_v0 = vshll.u32 %v2932_v54, %v1988_v53 }
 0x1ac   :  { %v651_v4 = vor.u32 %v650_v56, %v649_v47  ;;  %v659_v6 = vshrl.u32 %v1701_v61, %v647_v16  ;;  %v661_v7 = vshll.u32 %v1701_v61, %v1988_v53  ;;  %v662_v8 = vshrl.u32 %v1702_v11, %v647_v16 }
 0x1ad   :  { %v1253_v9 = vand.u32 2139095040, %v1972_v36  ;;  %v587_v10 = vadd.s32 1, %v2023_v45  ;;  %v654_v12 = vor.u32 %v653_v60, %v652_v58  ;;  %v657_v17 = vor.u32 %v656_v63, %v655_v62 }
 0x1ae   :  { %v584_v22 = vmul.u32 %v1977_v44, %v568_v37  ;;  %vm586_vm11 = vc.u32 %v2032_v55, %v2022_v43  ;;  %v660_v24 = vor.u32 %v659_v6, %v658_v0  ;;  %v663_v27 = vor.u32 %v662_v8, %v661_v7 }
 0x1af   :  { %v588_v29 = vsel %vm586_vm11, %v587_v10, %v2023_v45  ;;  %v640_v30 = vor.u32 8388608, %v1983_v50  ;;  %v648_v53 = vshrl.u32 %v1700_v57, %v647_v16  ;;  %vm664_vm12 = vcmp.lt.s32.totalorder %v1998_v5, 1 }
 0x1b0   :  { %v589_v32 = vadd.s32 %v588_v29, %v584_v22  ;;  %vm666_vm13 = vcmp.lt.s32.totalorder %v1998_v5, 3  ;;  %vm667_vm14 = vcmp.lt.s32.totalorder %v1998_v5, 4  ;;  %v672_v44 = vsel %vm664_vm12, %v651_v4, %v654_v12 }
 0x1b1   :  { %v669_v33 = vsel %vm667_vm14, %v657_v17, 2102212464  ;;  %v673_v34 = vsel %vm667_vm14, %v660_v24, 920167782  ;;  %v676_v37 = vsel %vm664_vm12, %v654_v12, %v657_v17  ;;  %v677_v50 = vsel %vm667_vm14, %v663_v27, 1326507024  ;;  %v2109_v27 = vpop.permute.xlu0 %1431 }
 0x1b2   :  { %v590_v16 = vadd.s32 536870912, %v589_v32  ;;  %vm665_vm15 = vcmp.lt.s32.totalorder %v1998_v5, 2  ;;  %v674_v39 = vsel %vm666_vm13, %v657_v17, %v673_v34  ;;  %v678_v42 = vsel %vm666_vm13, %v660_v24, %v677_v50 }
 0x1b3   :  { %v1552_v45 = vadd.s32 4294967169, %v2007_v19  ;;  %v675_v47 = vsel %vm665_vm15, %v672_v44, %v674_v39  ;;  %v679_v51 = vsel %vm665_vm15, %v676_v37, %v678_v42  ;;  %v680_v56 = vshll.u32 %v640_v30, 8 }
 0x1b4   :  { %v1556_v58 = vadd.s32 4294967169, %v2009_v20  ;;  %v2079_v60 = vshrl.u32 %v590_v16, 30  ;;  %v668_v62 = vsel %vm664_vm12, %v648_v53, %v651_v4  ;;  %v670_v63 = vsel %vm666_vm13, %v654_v12, %v669_v33  ;;  %v2095_v20 = vpop.permute.xlu1 %1433 }
 0x1b5   :  { %v2085_v0 = vmul.u32.u64.low %v680_v56, %v679_v51  ;;  %v2086_v6 = vmul.u32.u64.high %v680_v56, %v679_v51, %v2085_v0  ;;  %v2088_v19 = vmul.u32.u64.low %v680_v56, %v675_v47  ;;  %v2089_v7 = vmul.u32.u64.high %v680_v56, %v675_v47, %v2088_v19 }
 0x1b6   :  { %v2093_v8 = vshrl.u32 %v1975_v41, 5  ;;  %v1254_v10 = vshrl.u32 %v1253_v9, 23  ;;  %v592_v17 = vshll.u32 %v2079_v60, 30  ;;  %v2099_v4 = vshrl.u32 %v2014_v23, 5 }
 0x1b7   :  { %v2102_v12 = vand.u32 31, %v2014_v23  ;;  %v2105_v22 = vand.u32 31, %v2019_v35  ;;  %v2107_v24 = vadd.s32 1, %v1552_v45  ;;  %v671_v9 = vsel %vm665_vm15, %v668_v62, %v670_v63 }
 0x1b8   :  { %v2111_v41 = vsub.s32 %v589_v32, %v592_v17  ;;  %v735_v29 = vand.u32 2147483647, %v1953_v2  ;;  %v753_v30 = vshrl.u32 %v1697_v46, %v2003_v13  ;;  %v2118_v53 = vadd.s32 1, %v1556_v58 }
 0x1b9   :  { %vm689_vm0 = vc.u32 %v2086_v6, %v2088_v19  ;;  %v690_v23 = vadd.s32 1, %v2089_v7  ;;  %v756_v44 = vshrl.u32 %v1698_v48, %v2003_v13  ;;  %v2125_v32 = vadd.s32 4294967169, %v1254_v10 }
 0x1ba   :  { %v585_v5 = vadd.s32 %v2022_v43, %v2032_v55  ;;  %v595_v33 = vsub.s32 0, %v2111_v41  ;;  %v752_v34 = vshll.u32 %v1700_v57, %v1986_v52  ;;  %v687_v37 = vmul.u32 %v680_v56, %v671_v9 }
 0x1bb   :  { %v691_v50 = vsel %vm689_vm0, %v690_v23, %v2089_v7  ;;  %v755_v16 = vshll.u32 %v1697_v46, %v1986_v52  ;;  %v759_v39 = vshrl.u32 %v2932_v54, %v2003_v13  ;;  %v742_v43 = vand.u32 8388607, %v735_v29 }
 0x1bc   :  { %v1533_v45 = vmin.u32 %v595_v33, %v2111_v41  ;;  %v754_v55 = vor.u32 %v753_v30, %v752_v34  ;;  %v758_v47 = vshll.u32 %v1698_v48, %v1986_v52  ;;  %v692_v51 = vadd.s32 %v691_v50, %v687_v37 }
 0x1bd   :  { %v757_v56 = vor.u32 %v756_v44, %v755_v16  ;;  %v761_v58 = vshll.u32 %v2932_v54, %v1986_v52  ;;  %v762_v62 = vshrl.u32 %v1701_v61, %v2003_v13  ;;  %v764_v10 = vshll.u32 %v1701_v61, %v1986_v52 }
 0x1be   :  { %v597_v0 = vclz %v1533_v45  ;;  %v760_v7 = vor.u32 %v759_v39, %v758_v47  ;;  %v765_v17 = vshrl.u32 %v1702_v11, %v2003_v13  ;;  %vm1055_vm2 = vcmp.gt.s32.totalorder %v2107_v24, 0 }
 0x1bf   :  { %v615_v9 = vsub.s32 4, %v2079_v60  ;;  %v693_v30 = vadd.s32 536870912, %v692_v51  ;;  %v751_v23 = vshrl.u32 %v1700_v57, %v2003_v13  ;;  %v763_v44 = vor.u32 %v762_v62, %v761_v58 }
 0x1c0   :  { %v1534_v34 = vadd.s32 4294967294, %v597_v0  ;;  %v743_v52 = vor.u32 8388608, %v742_v43  ;;  %v766_v37 = vor.u32 %v765_v17, %v764_v10  ;;  %vm770_vm3 = vcmp.lt.s32.totalorder %v2093_v8, 4 }
 0x1c1   :  { %v2167_v50 = vshrl.u32 %v693_v30, 30  ;;  %vm767_vm4 = vcmp.lt.s32.totalorder %v2093_v8, 1  ;;  %vm769_vm5 = vcmp.lt.s32.totalorder %v2093_v8, 3  ;;  %v776_v13 = vsel %vm770_vm3, %v763_v44, 920167782 }
 0x1c2   :  { %vm531_vm6 = vcmp.lt.s32.totalorder %v1950_v59, 0  ;;  %vm1535_vm7 = vcmp.lt.s32.totalorder %v1534_v34, 0  ;;  %vm768_vm8 = vcmp.lt.s32.totalorder %v2093_v8, 2  ;;  %v775_v39 = vsel %vm767_vm4, %v754_v55, %v757_v56 }
 0x1c3   :  { %v600_v45 = vsel %vm1535_vm7, 0, %v1534_v34  ;;  %v695_v43 = vshll.u32 %v2167_v50, 30  ;;  %v771_v47 = vsel %vm767_vm4, %v751_v23, %v754_v55  ;;  %v779_v58 = vsel %vm767_vm4, %v757_v56, %v760_v7 }
 0x1c4   :  { %v1373_v42 = vpop.permute.xlu1 %1372  ;;  %v605_v0 = vsub.s32 4294967266, %v600_v45  ;;  %v772_v10 = vsel %vm770_vm3, %v760_v7, 2102212464  ;;  %v780_v17 = vsel %vm770_vm3, %v766_v37, 1326507024  ;;  %v602_v37 = vshll.u32 %v2111_v41, %v600_v45 }
 0x1c5   :  { %1396 = vst.msk [vmem:[%s2928_s8 + $0x8] sm:$0xff] %vm1394_vm1, %v1373_v42  ;;  %v777_v42 = vsel %vm769_vm5, %v760_v7, %v776_v13  ;;  %vm2192_vm9 = vcmp.le.f32.partialorder %v529_v18, 0.7853982  ;;  %v2196_v55 = vsub.s32 %v692_v51, %v695_v43  ;;  %v781_v7 = vsel %vm769_vm5, %v763_v44, %v780_v17 }
 0x1c6   :  { %v1371_v63 = vpop.permute.xlu0 %1370  ;;  %v778_v23 = vsel %vm768_vm8, %v775_v39, %v777_v42  ;;  %v782_v18 = vsel %vm768_vm8, %v779_v58, %v781_v7  ;;  %v773_v39 = vsel %vm769_vm5, %v757_v56, %v772_v10  ;;  %v2220_v58 = vsub.s32 32, %v2102_v12 }
 0x1c7   :  { %1395 = vst.msk [vmem:[%s2928_s8] sm:$0xff] %vm1394_vm1, %v1371_v63  ;;  %v601_v63 = vsub.s32 32, %v600_v45  ;;  %v698_v51 = vsub.s32 0, %v2196_v55  ;;  %vm1158_vm10 = vcmp.gt.s32.totalorder %v2118_v53, 0  ;;  %v774_v17 = vsel %vm768_vm8, %v771_v47, %v773_v39 }
 0x1c8   :  { %v1377_v33 = vpop.permute.xlu1 %1376  ;;  %v2931_v7 = vand.u32 2147483647, %v1959_v14  ;;  %v2254_v8 = vadd.s32 1, %v2125_v32  ;;  %v688_v32 = vadd.s32 %v2088_v19, %v2086_v6  ;;  %vm634_vm12 = vcmp.lt.s32.totalorder %v1955_v3, 0 }
 0x1c9   :  { %1398 = vst.msk [vmem:[%s2928_s8 + $0x18] sm:$0xff] %vm1394_vm1, %v1377_v33  ;;  %v783_v33 = vshll.u32 %v743_v52, 8  ;;  %v603_v13 = vshrl.u32 %v585_v5, %v601_v63  ;;  %v2226_v63 = vsub.s32 32, %v2105_v22  ;;  %v1537_v56 = vmin.u32 %v698_v51, %v2196_v55 }
 0x1ca   :  { %v1375_v16 = vpop.permute.xlu0 %1374  ;;  %v856_v6 = vshrl.u32 %v1697_v46, %v2220_v58  ;;  %vm2284_vm14 = vcmp.le.f32.partialorder %v632_v40, 0.7853982  ;;  %v861_v40 = vshll.u32 %v1698_v48, %v2102_v12  ;;  %vm870_vm15 = vcmp.lt.s32.totalorder %v2099_v4, 1 }
 0x1cb   :  { %1397 = vst.msk [vmem:[%s2928_s8 + $0x10] sm:$0xff] %vm1394_vm1, %v1375_v16  ;;  %v606_v16 = vadd.s32 127, %v605_v0  ;;  %v2212_v44 = vmul.u32.u64.low %v783_v33, %v782_v18  ;;  %v2213_v52 = vmul.u32.u64.high %v783_v33, %v782_v18, %v2212_v44  ;;  %v604_v41 = vor.u32 %v603_v13, %v602_v37 }
 0x1cc   :  { %v1381_v62 = vpop.permute.xlu1 %1380  ;;  %v2215_v45 = vmul.u32.u64.low %v783_v33, %v778_v23  ;;  %v2216_v43 = vmul.u32.u64.high %v783_v33, %v778_v23, %v2215_v45  ;;  %v2236_v0 = vsel %vm1055_vm2, %v2107_v24, 0  ;;  %v616_v23 = vsel %vm531_vm6, %v615_v9, %v2079_v60 }
 0x1cd   :  { %1400 = vst.msk [vmem:[%s2928_s8 + $0x28] sm:$0xff] %vm1394_vm1, %v1381_v62  ;;  %v607_v5 = vshll.u32 %v606_v16, 23  ;;  %v2223_v62 = vshrl.u32 %v2019_v35, 5  ;;  %v700_v24 = vclz %v1537_v56  ;;  %v2258_v13 = vand.u32 31, %v2236_v0 }
 0x1ce   :  { %v1379_v34 = vpop.permute.xlu0 %1378  ;;  %vm792_vm11 = vc.u32 %v2213_v52, %v2215_v45  ;;  %v793_v37 = vadd.s32 1, %v2216_v43  ;;  %v2261_v16 = vsel %vm1158_vm10, %v2118_v53, 0  ;;  %v790_v9 = vmul.u32 %v783_v33, %v774_v17 }
 0x1cf   :  { %1399 = vst.msk [vmem:[%s2928_s8 + $0x20] sm:$0xff] %vm1394_vm1, %v1379_v34  ;;  %v608_v35 = vor.u32 4788187, %v607_v5  ;;  %v611_v34 = vcvt.s32.f32 %v604_v41  ;;  %v1538_v60 = vadd.s32 4294967294, %v700_v24  ;;  %v618_v51 = vsel %vm2192_vm9, 0, %v616_v23 }
 0x1d0   :  { %v1385_v42 = vpop.permute.xlu1 %1384  ;;  %v794_v39 = vsel %vm792_vm11, %v793_v37, %v2216_v43  ;;  %v718_v44 = vsub.s32 4, %v2167_v50  ;;  %v2272_v53 = vand.u32 8388607, %v2931_v7  ;;  %v855_v5 = vshll.u32 %v1700_v57, %v2102_v12 }
 0x1d1   :  { %1402 = vst.msk [vmem:[%s2928_s8 + $0x38] sm:$0xff] %vm1394_vm1, %v1385_v42  ;;  %v609_v47 = vand.u32 2147483647, %v608_v35  ;;  %vm1539_vm13 = vcmp.lt.s32.totalorder %v1538_v60, 0  ;;  %v795_v42 = vadd.s32 %v794_v39, %v790_v9  ;;  %v859_v24 = vshrl.u32 %v1698_v48, %v2220_v58 }
 0x1d2   :  { %v1383_v10 = vpop.permute.xlu0 %1382  ;;  %v703_v41 = vsel %vm1539_vm13, 0, %v1538_v60  ;;  %vm872_vm0 = vcmp.lt.s32.totalorder %v2099_v4, 3  ;;  %vm871_vm4 = vcmp.lt.s32.totalorder %v2099_v4, 2  ;;  %vm621_vm7 = vweird.f32 %v1950_v59 }
 0x1d3   :  { %1401 = vst.msk [vmem:[%s2928_s8 + $0x30] sm:$0xff] %vm1394_vm1, %v1383_v10  ;;  %v612_v18 = vmul.f32 %v611_v34, %v609_v47  ;;  %v704_v19 = vsub.s32 32, %v703_v41  ;;  %v708_v43 = vsub.s32 4294967266, %v703_v41  ;;  %v796_v56 = vadd.s32 536870912, %v795_v42 }
 0x1d4   :  { %v858_v10 = vshll.u32 %v1697_v46, %v2102_v12  ;;  %v705_v23 = vshll.u32 %v2196_v55, %v703_v41  ;;  %v862_v47 = vshrl.u32 %v2932_v54, %v2220_v58  ;;  %v864_v55 = vshll.u32 %v2932_v54, %v2102_v12 }
 0x1d5   :  { %v613_v33 = vxor.u32 2147483648, %v612_v18  ;;  %v706_v37 = vshrl.u32 %v688_v32, %v704_v19  ;;  %v709_v60 = vadd.s32 127, %v708_v43  ;;  %v2296_v9 = vshrl.u32 %v796_v56, 30 }
 0x1d6   :  { %v857_v41 = vor.u32 %v856_v6, %v855_v5  ;;  %v860_v32 = vor.u32 %v859_v24, %v858_v10  ;;  %v868_v43 = vshrl.u32 %v1702_v11, %v2220_v58  ;;  %v2307_v56 = vand.u32 3, %v618_v51 }
 0x1d7   :  { %v614_v35 = vsel %vm531_vm6, %v613_v33, %v612_v18  ;;  %v865_v18 = vshrl.u32 %v1701_v61, %v2220_v58  ;;  %v707_v39 = vor.u32 %v706_v37, %v705_v23  ;;  %v710_v33 = vshll.u32 %v709_v60, 23 }
 0x1d8   :  { %v617_v34 = vsel %vm2192_vm9, %v1950_v59, %v614_v35  ;;  %v798_v30 = vshll.u32 %v2296_v9, 30  ;;  %v863_v54 = vor.u32 %v862_v47, %v861_v40  ;;  %v846_v23 = vor.u32 8388608, %v2272_v53 }
 0x1d9   :  { %1661 = vcosq.f32 %v617_v34  ;;  %v866_v19 = vor.u32 %v865_v18, %v864_v55  ;;  %v711_v35 = vor.u32 4788187, %v710_v33  ;;  %v867_v5 = vshll.u32 %v1701_v61, %v2102_v12 }
 0x1da   :  { %1663 = vsinq.f32 %v617_v34  ;;  %v2309_v7 = vsub.s32 %v795_v42, %v798_v30  ;;  %v719_v34 = vsel %vm634_vm12, %v718_v44, %v2167_v50  ;;  %v714_v10 = vcvt.s32.f32 %v707_v39 }
 0x1db   :  { %v712_v6 = vand.u32 2147483647, %v711_v35  ;;  %vm873_vm1 = vcmp.lt.s32.totalorder %v2099_v4, 4  ;;  %v869_v42 = vor.u32 %v868_v43, %v867_v5  ;;  %v878_v24 = vsel %vm870_vm15, %v857_v41, %v860_v32 }
 0x1dc   :  { %v801_v51 = vsub.s32 0, %v2309_v7  ;;  %v879_v50 = vsel %vm873_vm1, %v866_v19, 920167782  ;;  %v721_v12 = vsel %vm2284_vm14, 0, %v719_v34  ;;  %vm624_vm2 = vcmp.eq.s32.totalorder %v2307_v56, 0 }
 0x1dd   :  { %v715_v44 = vmul.f32 %v714_v10, %v712_v6  ;;  %v880_v47 = vsel %vm872_vm0, %v863_v54, %v879_v50  ;;  %vm627_vm3 = vcmp.eq.s32.totalorder %v2307_v56, 2  ;;  %v854_v37 = vshrl.u32 %v1700_v57, %v2220_v58 }
 0x1de   :  { %v1541_v53 = vmin.u32 %v801_v51, %v2309_v7  ;;  %v875_v60 = vsel %vm873_vm1, %v863_v54, 2102212464  ;;  %vm623_vm5 = vcmp.lt.s32.totalorder %v2307_v56, 2  ;;  %v881_v18 = vsel %vm871_vm4, %v878_v24, %v880_v47 }
 0x1df   :  { %v716_v40 = vxor.u32 2147483648, %v715_v44  ;;  %v882_v39 = vsel %vm870_vm15, %v860_v32, %v863_v54  ;;  %vm1261_vm6 = vcmp.gt.s32.totalorder %v2254_v8, 0  ;;  %v2344_v58 = vand.u32 3, %v721_v12 }
 0x1e0   :  { %v803_v55 = vclz %v1541_v53  ;;  %v874_v33 = vsel %vm870_vm15, %v854_v37, %v857_v41  ;;  %v883_v30 = vsel %vm873_vm1, %v869_v42, 1326507024  ;;  %v886_v43 = vshll.u32 %v846_v23, 8 }
 0x1e1   :  { %v717_v35 = vsel %vm634_vm12, %v716_v40, %v715_v44  ;;  %v876_v54 = vsel %vm872_vm0, %v860_v32, %v875_v60  ;;  %v884_v5 = vsel %vm872_vm0, %v866_v19, %v883_v30  ;;  %v791_v17 = vadd.s32 %v2215_v45, %v2213_v52 }
 0x1e2   :  { %v1542_v34 = vadd.s32 4294967294, %v803_v55  ;;  %v720_v6 = vsel %vm2284_vm14, %v1955_v3, %v717_v35  ;;  %v885_v41 = vsel %vm871_vm4, %v882_v39, %v884_v5  ;;  %v877_v47 = vsel %vm871_vm4, %v874_v33, %v876_v54 }
 0x1e3   :  { %v2361_v10 = vmul.u32.u64.low %v886_v43, %v881_v18  ;;  %v2362_v51 = vmul.u32.u64.high %v886_v43, %v881_v18, %v2361_v10  ;;  %1665 = vcosq.f32 %v720_v6  ;;  %v821_v60 = vsub.s32 4, %v2296_v9 }
 0x1e4   :  { %vm1543_vm8 = vcmp.lt.s32.totalorder %v1542_v34, 0  ;;  %v2365_v42 = vmul.u32.u64.low %v886_v43, %v885_v41  ;;  %v2366_v24 = vmul.u32.u64.high %v886_v43, %v885_v41, %v2365_v42  ;;  %1667 = vsinq.f32 %v720_v6 }
 0x1e5   :  { %v806_v19 = vsel %vm1543_vm8, 0, %v1542_v34  ;;  %v896_v40 = vadd.s32 1, %v2362_v51  ;;  %v941_v55 = vand.u32 2147483647, %v1961_v15  ;;  %vm737_vm9 = vcmp.lt.s32.totalorder %v1953_v2, 0 }
 0x1e6   :  { %v1662_v23 = vpop.eup %1661  ;;  %v807_v12 = vsub.s32 32, %v806_v19  ;;  %v811_v53 = vsub.s32 4294967266, %v806_v19  ;;  %v808_v52 = vshll.u32 %v2309_v7, %v806_v19  ;;  %v893_v33 = vmul.u32 %v886_v43, %v877_v47 }
 0x1e7   :  { %v1664_v32 = vpop.eup %1663  ;;  %v628_v50 = vxor.u32 2147483648, %v1662_v23  ;;  %vm895_vm10 = vc.u32 %v2366_v24, %v2361_v10  ;;  %v2389_v7 = vsub.s32 32, %v2258_v13  ;;  %vm2394_vm11 = vcmp.le.f32.partialorder %v735_v29, 0.7853982 }
 0x1e8   :  { %v625_v44 = vxor.u32 2147483648, %v1664_v32  ;;  %v809_v45 = vshrl.u32 %v791_v17, %v807_v12  ;;  %v812_v39 = vadd.s32 127, %v811_v53  ;;  %v897_v54 = vsel %vm895_vm10, %v896_v40, %v2362_v51 }
 0x1e9   :  { %v629_v37 = vsel %vm627_vm3, %v628_v50, %v1664_v32  ;;  %v2401_v59 = vsel %vm737_vm9, %v821_v60, %v2296_v9  ;;  %v898_v43 = vadd.s32 %v897_v54, %v893_v33  ;;  %v2406_v5 = vsel %vm1261_vm6, %v2254_v8, 0 }
 0x1ea   :  { %v626_v18 = vsel %vm624_vm2, %v1662_v23, %v625_v44  ;;  %v810_v35 = vor.u32 %v809_v45, %v808_v52  ;;  %v813_v34 = vshll.u32 %v812_v39, 23  ;;  %vm727_vm12 = vcmp.eq.s32.totalorder %v2344_v58, 0 }
 0x1eb   :  { %v630_v4 = vsel %vm623_vm5, %v626_v18, %v629_v37  ;;  %v948_v29 = vand.u32 8388607, %v941_v55  ;;  %vm726_vm13 = vcmp.lt.s32.totalorder %v2344_v58, 2  ;;  %vm730_vm14 = vcmp.eq.s32.totalorder %v2344_v58, 2 }
 0x1ec   :  { %v631_v30 = vsel %vm621_vm7, nan, %v630_v4  ;;  %v814_v6 = vor.u32 4788187, %v813_v34  ;;  %v899_v41 = vadd.s32 536870912, %v898_v43  ;;  %v959_v9 = vshrl.u32 %v1697_v46, %v2226_v63 }
 0x1ed   :  { %1460 = vrot.lane.b32.xlu0 %v631_v30, %s1703_s28  ;;  %v962_v51 = vshrl.u32 %v1698_v48, %v2226_v63  ;;  %vm724_vm15 = vweird.f32 %v1955_v3  ;;  %v817_v23 = vcvt.s32.f32 %v810_v35  ;;  %v824_v42 = vsel %vm2394_vm11, 0, %v2401_v59 }
 0x1ee   :  { %v815_v8 = vand.u32 2147483647, %v814_v6  ;;  %v968_v32 = vshrl.u32 %v1701_v61, %v2226_v63  ;;  %v2423_v50 = vshrl.u32 %v899_v41, 30  ;;  %v958_v17 = vshll.u32 %v1700_v57, %v2105_v22 }
 0x1ef   :  { %v961_v19 = vshll.u32 %v1697_v46, %v2105_v22  ;;  %v2940_v44 = vmov 2102212464   ;;  %v949_v47 = vor.u32 8388608, %v948_v29  ;;  %v971_v60 = vshrl.u32 %v1702_v11, %v2226_v63 }
 0x1f0   :  { %v965_v12 = vshrl.u32 %v2940_v44, %v2226_v63  ;;  %v818_v53 = vmul.f32 %v817_v23, %v815_v8  ;;  %v967_v37 = vshll.u32 %v2940_v44, %v2105_v22  ;;  %v1666_v40 = vpop.eup %1665  ;;  %v901_v18 = vshll.u32 %v2423_v50, 30 }
 0x1f1   :  { %v960_v52 = vor.u32 %v959_v9, %v958_v17  ;;  %v963_v45 = vor.u32 %v962_v51, %v961_v19  ;;  %v964_v39 = vshll.u32 %v1698_v48, %v2105_v22  ;;  %v1668_v4 = vpop.eup %1667  ;;  %v731_v33 = vxor.u32 2147483648, %v1666_v40 }
 0x1f2   :  { %v819_v30 = vxor.u32 2147483648, %v818_v53  ;;  %v969_v35 = vor.u32 %v968_v32, %v967_v37  ;;  %v970_v34 = vshll.u32 %v1701_v61, %v2105_v22  ;;  %v728_v54 = vxor.u32 2147483648, %v1668_v4 }
 0x1f3   :  { %v2440_v59 = vsub.s32 %v898_v43, %v901_v18  ;;  %v966_v6 = vor.u32 %v965_v12, %v964_v39  ;;  %vm973_vm1 = vcmp.lt.s32.totalorder %v2223_v62, 1  ;;  %v732_v29 = vsel %vm730_vm14, %v731_v33, %v1668_v4 }
 0x1f4   :  { %v820_v41 = vsel %vm737_vm9, %v819_v30, %v818_v53  ;;  %v972_v9 = vor.u32 %v971_v60, %v970_v34  ;;  %vm975_vm0 = vcmp.lt.s32.totalorder %v2223_v62, 3  ;;  %v729_v51 = vsel %vm727_vm12, %v1666_v40, %v728_v54 }
 0x1f5   :  { %v823_v22 = vsel %vm2394_vm11, %v1953_v2, %v820_v41  ;;  %v904_v43 = vsub.s32 0, %v2440_v59  ;;  %vm976_vm2 = vcmp.lt.s32.totalorder %v2223_v62, 4  ;;  %v733_v8 = vsel %vm726_vm13, %v729_v51, %v732_v29 }
 0x1f6   :  { %1669 = vcosq.f32 %v823_v22  ;;  %v981_v23 = vsel %vm973_vm1, %v960_v52, %v963_v45  ;;  %v982_v32 = vsel %vm976_vm2, %v969_v35, 920167782  ;;  %v734_v17 = vsel %vm724_vm15, nan, %v733_v8 }
 0x1f7   :  { %1671 = vsinq.f32 %v823_v22  ;;  %v1545_v56 = vmin.u32 %v904_v43, %v2440_v59  ;;  %v978_v19 = vsel %vm976_vm2, %v966_v6, 2102212464  ;;  %1462 = vrot.lane.b32.xlu1 %v734_v17, %s1703_s28  ;;  %v957_v58 = vshrl.u32 %v1700_v57, %v2226_v63 }
 0x1f8   :  { %vm974_vm3 = vcmp.lt.s32.totalorder %v2223_v62, 2  ;;  %v983_v12 = vsel %vm975_vm0, %v966_v6, %v982_v32  ;;  %v985_v3 = vsel %vm973_vm1, %v963_v45, %v966_v6  ;;  %v986_v60 = vsel %vm976_vm2, %v972_v9, 1326507024 }
 0x1f9   :  { %v906_v53 = vclz %v1545_v56  ;;  %v984_v37 = vsel %vm974_vm3, %v981_v23, %v983_v12  ;;  %v989_v40 = vshll.u32 %v949_v47, 8  ;;  %v2478_v18 = vand.u32 3, %v824_v42 }
 0x1fa   :  { %v977_v63 = vsel %vm973_vm1, %v957_v58, %v960_v52  ;;  %v979_v39 = vsel %vm975_vm0, %v963_v45, %v978_v19  ;;  %v987_v4 = vsel %vm975_vm0, %v969_v35, %v986_v60  ;;  %v2493_v42 = vshrl.u32 %v2236_v0, 5 }
 0x1fb   :  { %v1546_v33 = vadd.s32 4294967294, %v906_v53  ;;  %v988_v30 = vsel %vm974_vm3, %v985_v3, %v987_v4  ;;  %v2488_v34 = vmul.u32.u64.low %v989_v40, %v984_v37  ;;  %v2489_v54 = vmul.u32.u64.high %v989_v40, %v984_v37, %v2488_v34 }
 0x1fc   :  { %v2495_v47 = vmul.u32.u64.low %v989_v40, %v988_v30  ;;  %v2496_v6 = vmul.u32.u64.high %v989_v40, %v988_v30, %v2495_v47  ;;  %v2499_v52 = vand.u32 31, %v2261_v16  ;;  %v2502_v45 = vand.u32 31, %v2406_v5 }
 0x1fd   :  { %vm1547_vm4 = vcmp.lt.s32.totalorder %v1546_v33, 0  ;;  %v980_v35 = vsel %vm974_vm3, %v977_v63, %v979_v39  ;;  %vm830_vm5 = vcmp.eq.s32.totalorder %v2478_v18, 0  ;;  %vm833_vm6 = vcmp.eq.s32.totalorder %v2478_v18, 2 }
 0x1fe   :  { %v894_v0 = vadd.s32 %v2361_v10, %v2366_v24  ;;  %v909_v29 = vsel %vm1547_vm4, 0, %v1546_v33  ;;  %v1044_v41 = vand.u32 2147483647, %v1965_v25  ;;  %vm829_vm7 = vcmp.lt.s32.totalorder %v2478_v18, 2 }
 0x1ff   :  { %v910_v9 = vsub.s32 32, %v909_v29  ;;  %v914_v51 = vsub.s32 4294967266, %v909_v29  ;;  %v999_v22 = vadd.s32 1, %v2489_v54  ;;  %v1062_v62 = vshrl.u32 %v1697_v46, %v2389_v7 }
 0x200   :  { %vm827_vm8 = vweird.f32 %v1953_v2  ;;  %vm840_vm9 = vcmp.lt.s32.totalorder %v1959_v14, 0  ;;  %v996_v43 = vmul.u32 %v989_v40, %v980_v35  ;;  %vm998_vm10 = vc.u32 %v2496_v6, %v2488_v34 }
 0x201   :  { %v1061_v10 = vshll.u32 %v1700_v57, %v2258_v13  ;;  %v1065_v24 = vshrl.u32 %v1698_v48, %v2389_v7  ;;  %v911_v8 = vshll.u32 %v2440_v59, %v909_v29  ;;  %v912_v23 = vshrl.u32 %v894_v0, %v910_v9 }
 0x202   :  { %v915_v32 = vadd.s32 127, %v914_v51  ;;  %v1000_v17 = vsel %vm998_vm10, %v999_v22, %v2489_v54  ;;  %v924_v56 = vsub.s32 4, %v2423_v50  ;;  %v1051_v58 = vand.u32 8388607, %v1044_v41 }
 0x203   :  { %v1001_v19 = vadd.s32 %v1000_v17, %v996_v43  ;;  %v1064_v12 = vshll.u32 %v1697_v46, %v2258_v13  ;;  %v1670_v3 = vpop.eup %1669  ;;  %v913_v53 = vor.u32 %v912_v23, %v911_v8  ;;  %v1063_v60 = vor.u32 %v1062_v62, %v1061_v10 }
 0x204   :  { %v916_v37 = vshll.u32 %v915_v32, 23  ;;  %v1071_v59 = vshrl.u32 %v1701_v61, %v2389_v7  ;;  %v1672_v40 = vpop.eup %1671  ;;  %v834_v63 = vxor.u32 2147483648, %v1670_v3  ;;  %v1068_v33 = vshrl.u32 %v2940_v44, %v2389_v7 }
 0x205   :  { %v1002_v39 = vadd.s32 536870912, %v1001_v19  ;;  %v1066_v4 = vor.u32 %v1065_v24, %v1064_v12  ;;  %v831_v30 = vxor.u32 2147483648, %v1672_v40  ;;  %v1070_v47 = vshll.u32 %v2940_v44, %v2258_v13 }
 0x206   :  { %v917_v54 = vor.u32 4788187, %v916_v37  ;;  %v1074_v35 = vshrl.u32 %v1702_v11, %v2389_v7  ;;  %v835_v0 = vsel %vm833_vm6, %v834_v63, %v1672_v40  ;;  %v1067_v9 = vshll.u32 %v1698_v48, %v2258_v13 }
 0x207   :  { %v2540_v29 = vshrl.u32 %v1002_v39, 30  ;;  %v1073_v51 = vshll.u32 %v1701_v61, %v2258_v13  ;;  %v832_v22 = vsel %vm830_vm5, %v1670_v3, %v831_v30  ;;  %v920_v43 = vcvt.s32.f32 %v913_v53 }
 0x208   :  { %v918_v62 = vand.u32 2147483647, %v917_v54  ;;  %v1072_v10 = vor.u32 %v1071_v59, %v1070_v47  ;;  %v836_v24 = vsel %vm829_vm7, %v832_v22, %v835_v0  ;;  %v2941_v8 = vand.u32 2147483647, %v1959_v14 }
 0x209   :  { %v1004_v32 = vshll.u32 %v2540_v29, 30  ;;  %v1069_v17 = vor.u32 %v1068_v33, %v1067_v9  ;;  %v837_v13 = vsel %vm827_vm8, nan, %v836_v24  ;;  %v925_v3 = vsel %vm840_vm9, %v924_v56, %v2423_v50 }
 0x20a   :  { %vm2552_vm11 = vcmp.le.f32.partialorder %v2941_v8, 0.7853982  ;;  %v921_v12 = vmul.f32 %v920_v43, %v918_v62  ;;  %v1075_v53 = vor.u32 %v1074_v35, %v1073_v51  ;;  %1464 = vrot.lane.b32.xlu0 %v837_v13, %s1703_s28  ;;  %v1052_v37 = vor.u32 8388608, %v1051_v58 }
 0x20b   :  { %v2563_v18 = vsub.s32 %v1001_v19, %v1004_v32  ;;  %vm1076_vm12 = vcmp.lt.s32.totalorder %v2493_v42, 1  ;;  %vm1079_vm13 = vcmp.lt.s32.totalorder %v2493_v42, 4  ;;  %vm1078_vm14 = vcmp.lt.s32.totalorder %v2493_v42, 3 }
 0x20c   :  { %v922_v59 = vxor.u32 2147483648, %v921_v12  ;;  %v1084_v2 = vsel %vm1076_vm12, %v1063_v60, %v1066_v4  ;;  %v1085_v40 = vsel %vm1079_vm13, %v1072_v10, 920167782  ;;  %v1060_v50 = vshrl.u32 %v1700_v57, %v2389_v7 }
 0x20d   :  { %v1007_v63 = vsub.s32 0, %v2563_v18  ;;  %vm1077_vm15 = vcmp.lt.s32.totalorder %v2493_v42, 2  ;;  %v1086_v56 = vsel %vm1078_vm14, %v1069_v17, %v1085_v40  ;;  %v1081_v58 = vsel %vm1079_vm13, %v1069_v17, 2102212464 }
 0x20e   :  { %v923_v19 = vsel %vm840_vm9, %v922_v59, %v921_v12  ;;  %v1088_v39 = vsel %vm1076_vm12, %v1066_v4, %v1069_v17  ;;  %v1089_v33 = vsel %vm1079_vm13, %v1075_v53, 1326507024  ;;  %v927_v7 = vsel %vm2552_vm11, 0, %v925_v3 }
 0x20f   :  { %v926_v30 = vsel %vm2552_vm11, %v1959_v14, %v923_v19  ;;  %v1549_v54 = vmin.u32 %v1007_v63, %v2563_v18  ;;  %v1087_v47 = vsel %vm1077_vm15, %v1084_v2, %v1086_v56  ;;  %v1080_v35 = vsel %vm1076_vm12, %v1060_v50, %v1063_v60 }
 0x210   :  { %1673 = vcosq.f32 %v926_v30  ;;  %v1090_v0 = vsel %vm1078_vm14, %v1072_v10, %v1089_v33  ;;  %v1092_v9 = vshll.u32 %v1052_v37, 8  ;;  %v1082_v22 = vsel %vm1078_vm14, %v1066_v4, %v1081_v58 }
 0x211   :  { %1675 = vsinq.f32 %v926_v30  ;;  %v1009_v51 = vclz %v1549_v54  ;;  %v1091_v62 = vsel %vm1077_vm15, %v1088_v39, %v1090_v0  ;;  %v2603_v60 = vand.u32 3, %v927_v7 }
 0x212   :  { %v2596_v43 = vmul.u32.u64.low %v1092_v9, %v1091_v62  ;;  %v2597_v24 = vmul.u32.u64.high %v1092_v9, %v1091_v62, %v2596_v43  ;;  %v2599_v8 = vmul.u32.u64.low %v1092_v9, %v1087_v47  ;;  %v2600_v23 = vmul.u32.u64.high %v1092_v9, %v1087_v47, %v2599_v8 }
 0x213   :  { %v1550_v32 = vadd.s32 4294967294, %v1009_v51  ;;  %v1162_v10 = vsub.s32 32, %v2499_v52  ;;  %v1083_v17 = vsel %vm1077_vm15, %v1080_v35, %v1082_v22  ;;  %v2609_v4 = vshrl.u32 %v2261_v16, 5 }
 0x214   :  { %v2612_v13 = vsub.s32 32, %v2502_v45  ;;  %v997_v12 = vadd.s32 %v2488_v34, %v2496_v6  ;;  %v1027_v53 = vsub.s32 4, %v2540_v29  ;;  %vm1101_vm0 = vc.u32 %v2597_v24, %v2599_v8 }
 0x215   :  { %vm1551_vm1 = vcmp.lt.s32.totalorder %v1550_v32, 0  ;;  %v1102_v37 = vadd.s32 1, %v2600_v23  ;;  %vm936_vm2 = vcmp.eq.s32.totalorder %v2603_v60, 2  ;;  %v1099_v59 = vmul.u32 %v1092_v9, %v1083_v17 }
 0x216   :  { %v1012_v3 = vsel %vm1551_vm1, 0, %v1550_v32  ;;  %v1147_v2 = vand.u32 2147483647, %v1967_v26  ;;  %vm933_vm3 = vcmp.eq.s32.totalorder %v2603_v60, 0  ;;  %v1163_v6 = vshrl.u32 %v1700_v57, %v1162_v10 }
 0x217   :  { %v1013_v42 = vsub.s32 32, %v1012_v3  ;;  %v1017_v16 = vsub.s32 4294967266, %v1012_v3  ;;  %v1103_v34 = vsel %vm1101_vm0, %v1102_v37, %v2600_v23  ;;  %v1165_v40 = vshrl.u32 %v1697_v46, %v1162_v10 }
 0x218   :  { %v1168_v63 = vshrl.u32 %v1698_v48, %v1162_v10  ;;  %vm932_vm4 = vcmp.lt.s32.totalorder %v2603_v60, 2  ;;  %v1014_v50 = vshll.u32 %v2563_v18, %v1012_v3  ;;  %v1104_v58 = vadd.s32 %v1103_v34, %v1099_v59 }
 0x219   :  { %v1015_v56 = vshrl.u32 %v997_v12, %v1013_v42  ;;  %v1018_v19 = vadd.s32 127, %v1017_v16  ;;  %vm930_vm5 = vweird.f32 %v1959_v14  ;;  %v1164_v39 = vshll.u32 %v1700_v57, %v2499_v52 }
 0x21a   :  { %v1171_v33 = vshrl.u32 %v2940_v44, %v1162_v10  ;;  %v1173_v30 = vshll.u32 %v2940_v44, %v2499_v52  ;;  %v1174_v7 = vshrl.u32 %v1701_v61, %v1162_v10  ;;  %vm943_vm6 = vcmp.lt.s32.totalorder %v1961_v15, 0 }
 0x21b   :  { %v1016_v54 = vor.u32 %v1015_v56, %v1014_v50  ;;  %v1019_v47 = vshll.u32 %v1018_v19, 23  ;;  %v1105_v18 = vadd.s32 536870912, %v1104_v58  ;;  %v1167_v35 = vshll.u32 %v1697_v46, %v2499_v52 }
 0x21c   :  { %v1154_v0 = vand.u32 8388607, %v1147_v2  ;;  %v1170_v9 = vshll.u32 %v1698_v48, %v2499_v52  ;;  %v1175_v51 = vor.u32 %v1174_v7, %v1173_v30  ;;  %v1177_v22 = vshrl.u32 %v1702_v11, %v1162_v10 }
 0x21d   :  { %v1674_v62 = vpop.eup %1673  ;;  %vm2646_vm7 = vcmp.le.f32.partialorder %v941_v55, 0.7853982  ;;  %v1020_v23 = vor.u32 4788187, %v1019_v47  ;;  %v2650_v32 = vshrl.u32 %v1105_v18, 30  ;;  %v1166_v17 = vor.u32 %v1165_v40, %v1164_v39 }
 0x21e   :  { %v1169_v12 = vor.u32 %v1168_v63, %v1167_v35  ;;  %v1676_v3 = vpop.eup %1675  ;;  %v937_v37 = vxor.u32 2147483648, %v1674_v62  ;;  %v1023_v42 = vcvt.s32.f32 %v1016_v54  ;;  %v1172_v16 = vor.u32 %v1171_v33, %v1170_v9 }
 0x21f   :  { %v1176_v59 = vshll.u32 %v1701_v61, %v2499_v52  ;;  %v934_v10 = vxor.u32 2147483648, %v1676_v3  ;;  %v1021_v34 = vand.u32 2147483647, %v1020_v23  ;;  %v1107_v50 = vshll.u32 %v2650_v32, 30 }
 0x220   :  { %vm1182_vm8 = vcmp.lt.s32.totalorder %v2609_v4, 4  ;;  %v938_v55 = vsel %vm936_vm2, %v937_v37, %v1676_v3  ;;  %v1155_v56 = vor.u32 8388608, %v1154_v0  ;;  %vm1179_vm9 = vcmp.lt.s32.totalorder %v2609_v4, 1 }
 0x221   :  { %v1178_v19 = vor.u32 %v1177_v22, %v1176_v59  ;;  %v1188_v40 = vsel %vm1182_vm8, %v1175_v51, 920167782  ;;  %v935_v63 = vsel %vm933_vm3, %v1674_v62, %v934_v10  ;;  %v1024_v39 = vmul.f32 %v1023_v42, %v1021_v34 }
 0x222   :  { %v2662_v33 = vsub.s32 %v1104_v58, %v1107_v50  ;;  %v939_v52 = vsel %vm932_vm4, %v935_v63, %v938_v55  ;;  %vm1181_vm10 = vcmp.lt.s32.totalorder %v2609_v4, 3  ;;  %v1184_v30 = vsel %vm1182_vm8, %v1172_v16, 2102212464 }
 0x223   :  { %v1187_v7 = vsel %vm1179_vm9, %v1166_v17, %v1169_v12  ;;  %v940_v54 = vsel %vm930_vm5, nan, %v939_v52  ;;  %v1025_v47 = vxor.u32 2147483648, %v1024_v39  ;;  %v1189_v18 = vsel %vm1181_vm10, %v1172_v16, %v1188_v40 }
 0x224   :  { %v1110_v58 = vsub.s32 0, %v2662_v33  ;;  %1466 = vrot.lane.b32.xlu1 %v940_v54, %s1703_s28  ;;  %v1028_v60 = vsel %vm943_vm6, %v1027_v53, %v2540_v29  ;;  %vm1180_vm11 = vcmp.lt.s32.totalorder %v2609_v4, 2  ;;  %v1191_v14 = vsel %vm1179_vm9, %v1169_v12, %v1172_v16 }
 0x225   :  { %v1192_v35 = vsel %vm1182_vm8, %v1178_v19, 1326507024  ;;  %v1026_v0 = vsel %vm943_vm6, %v1025_v47, %v1024_v39  ;;  %v1183_v22 = vsel %vm1179_vm9, %v1163_v6, %v1166_v17  ;;  %v1185_v62 = vsel %vm1181_vm10, %v1169_v12, %v1184_v30 }
 0x226   :  { %v1553_v9 = vmin.u32 %v1110_v58, %v2662_v33  ;;  %v1029_v29 = vsel %vm2646_vm7, %v1961_v15, %v1026_v0  ;;  %v1190_v53 = vsel %vm1180_vm11, %v1187_v7, %v1189_v18  ;;  %v1193_v23 = vsel %vm1181_vm10, %v1175_v51, %v1192_v35 }
 0x227   :  { %v1195_v3 = vshll.u32 %v1155_v56, 8  ;;  %v1030_v37 = vsel %vm2646_vm7, 0, %v1028_v60  ;;  %1677 = vcosq.f32 %v1029_v29  ;;  %v1194_v6 = vsel %vm1180_vm11, %v1191_v14, %v1193_v23 }
 0x228   :  { %v1112_v42 = vclz %v1553_v9  ;;  %1679 = vsinq.f32 %v1029_v29  ;;  %v1250_v16 = vand.u32 2147483647, %v1972_v36  ;;  %v1186_v10 = vsel %vm1180_vm11, %v1183_v22, %v1185_v62 }
 0x229   :  { %v2706_v17 = vmul.u32.u64.low %v1195_v3, %v1194_v6  ;;  %v2707_v12 = vmul.u32.u64.high %v1195_v3, %v1194_v6, %v2706_v17  ;;  %v2712_v51 = vmul.u32.u64.low %v1195_v3, %v1190_v53  ;;  %v2713_v34 = vmul.u32.u64.high %v1195_v3, %v1190_v53, %v2712_v51 }
 0x22a   :  { %v1554_v59 = vadd.s32 4294967294, %v1112_v42  ;;  %v2717_v43 = vshrl.u32 %v2406_v5, 5  ;;  %v2719_v50 = vand.u32 3, %v1030_v37  ;;  %v1100_v55 = vadd.s32 %v2599_v8, %v2597_v24 }
 0x22b   :  { %v1202_v19 = vmul.u32 %v1195_v3, %v1186_v10  ;;  %vm1204_vm13 = vc.u32 %v2707_v12, %v2712_v51  ;;  %v2727_v4 = vand.u32 8388607, %v1250_v16  ;;  %v1205_v5 = vadd.s32 1, %v2713_v34 }
 0x22c   :  { %vm1555_vm12 = vcmp.lt.s32.totalorder %v1554_v59, 0  ;;  %v1268_v39 = vshrl.u32 %v1697_v46, %v2612_v13  ;;  %v1271_v24 = vshrl.u32 %v1698_v48, %v2612_v13  ;;  %v1274_v8 = vshrl.u32 %v2940_v44, %v2612_v13 }
 0x22d   :  { %v1115_v56 = vsel %vm1555_vm12, 0, %v1554_v59  ;;  %v1276_v30 = vshll.u32 %v2940_v44, %v2502_v45  ;;  %vm1036_vm14 = vcmp.eq.s32.totalorder %v2719_v50, 0  ;;  %v1206_v47 = vsel %vm1204_vm13, %v1205_v5, %v2713_v34 }
 0x22e   :  { %v1116_v40 = vsub.s32 32, %v1115_v56  ;;  %v1120_v63 = vsub.s32 4294967266, %v1115_v56  ;;  %v1117_v52 = vshll.u32 %v2662_v33, %v1115_v56  ;;  %v1277_v58 = vshrl.u32 %v1701_v61, %v2612_v13 }
 0x22f   :  { %vm1035_vm15 = vcmp.lt.s32.totalorder %v2719_v50, 2  ;;  %v1207_v33 = vadd.s32 %v1206_v47, %v1202_v19  ;;  %v1267_v18 = vshll.u32 %v1700_v57, %v2502_v45  ;;  %v1270_v60 = vshll.u32 %v1697_v46, %v2502_v45 }
 0x230   :  { %v1118_v7 = vshrl.u32 %v1100_v55, %v1116_v40  ;;  %v1121_v54 = vadd.s32 127, %v1120_v63  ;;  %v1280_v44 = vshrl.u32 %v1702_v11, %v2612_v13  ;;  %vm1033_vm1 = vweird.f32 %v1961_v15 }
 0x231   :  { %v1273_v0 = vshll.u32 %v1698_v48, %v2502_v45  ;;  %v1278_v9 = vor.u32 %v1277_v58, %v1276_v30  ;;  %vm1039_vm0 = vcmp.eq.s32.totalorder %v2719_v50, 2  ;;  %vm1046_vm2 = vcmp.lt.s32.totalorder %v1965_v25, 0 }
 0x232   :  { %v1119_v14 = vor.u32 %v1118_v7, %v1117_v52  ;;  %v1122_v35 = vshll.u32 %v1121_v54, 23  ;;  %v1208_v22 = vadd.s32 536870912, %v1207_v33  ;;  %v1266_v62 = vshrl.u32 %v1700_v57, %v2612_v13 }
 0x233   :  { %v1279_v46 = vshll.u32 %v1701_v61, %v2502_v45  ;;  %vm2761_vm3 = vcmp.le.f32.partialorder %v1044_v41, 0.7853982  ;;  %v1269_v48 = vor.u32 %v1268_v39, %v1267_v18  ;;  %v1272_v53 = vor.u32 %v1271_v24, %v1270_v60 }
 0x234   :  { %v1123_v29 = vor.u32 4788187, %v1122_v35  ;;  %v1275_v23 = vor.u32 %v1274_v8, %v1273_v0  ;;  %v1678_v3 = vpop.eup %1677  ;;  %v2765_v37 = vshrl.u32 %v1208_v22, 30  ;;  %v1258_v42 = vor.u32 8388608, %v2727_v4 }
 0x235   :  { %v1281_v6 = vor.u32 %v1280_v44, %v1279_v46  ;;  %vm1285_vm4 = vcmp.lt.s32.totalorder %v2717_v43, 4  ;;  %v1680_v57 = vpop.eup %1679  ;;  %v1040_v61 = vxor.u32 2147483648, %v1678_v3  ;;  %v1126_v13 = vcvt.s32.f32 %v1119_v14 }
 0x236   :  { %v1124_v45 = vand.u32 2147483647, %v1123_v29  ;;  %v1291_v41 = vsel %vm1285_vm4, %v1278_v9, 920167782  ;;  %v1037_v17 = vxor.u32 2147483648, %v1680_v57  ;;  %v1210_v59 = vshll.u32 %v2765_v37, 30 }
 0x237   :  { %vm1282_vm5 = vcmp.lt.s32.totalorder %v2717_v43, 1  ;;  %vm1284_vm6 = vcmp.lt.s32.totalorder %v2717_v43, 3  ;;  %v1041_v10 = vsel %vm1039_vm0, %v1040_v61, %v1680_v57  ;;  %v1295_v63 = vsel %vm1285_vm4, %v1281_v6, 1326507024 }
 0x238   :  { %v1127_v34 = vmul.f32 %v1126_v13, %v1124_v45  ;;  %v1290_v55 = vsel %vm1282_vm5, %v1269_v48, %v1272_v53  ;;  %v1294_v56 = vsel %vm1282_vm5, %v1272_v53, %v1275_v23  ;;  %v1038_v19 = vsel %vm1036_vm14, %v1678_v3, %v1037_v17 }
 0x239   :  { %v1211_v4 = vsub.s32 %v1207_v33, %v1210_v59  ;;  %v1292_v40 = vsel %vm1284_vm6, %v1275_v23, %v1291_v41  ;;  %v1042_v5 = vsel %vm1035_vm15, %v1038_v19, %v1041_v10  ;;  %vm1283_vm7 = vcmp.lt.s32.totalorder %v2717_v43, 2 }
 0x23a   :  { %v1128_v39 = vxor.u32 2147483648, %v1127_v34  ;;  %v1296_v52 = vsel %vm1284_vm6, %v1278_v9, %v1295_v63  ;;  %v1043_v24 = vsel %vm1033_vm1, nan, %v1042_v5  ;;  %v1287_v30 = vsel %vm1285_vm4, %v1275_v23, 2102212464 }
 0x23b   :  { %v1213_v8 = vsub.s32 0, %v1211_v4  ;;  %v1297_v7 = vsel %vm1283_vm7, %v1294_v56, %v1296_v52  ;;  %1468 = vrot.lane.b32.xlu0 %v1043_v24, %s1703_s28  ;;  %v1293_v54 = vsel %vm1283_vm7, %v1290_v55, %v1292_v40  ;;  %v1298_v47 = vshll.u32 %v1258_v42, 8 }
 0x23c   :  { %v1129_v50 = vsel %vm1046_vm2, %v1128_v39, %v1127_v34  ;;  %vm1443_vm8 = vcmask 785920   ;;  %v1130_v15 = vsub.s32 4, %v2650_v32  ;;  %v1286_v18 = vsel %vm1282_vm5, %v1266_v62, %v1269_v48 }
 0x23d   :  { %v1132_v58 = vsel %vm2761_vm3, %v1965_v25, %v1129_v50  ;;  %v1557_v33 = vmin.u32 %v1213_v8, %v1211_v4  ;;  %1444 = vst.msk [vmem:[%s2928_s8] sm:$0xff] %vm1443_vm8, %v2016_v28  ;;  %1445 = vst.msk [vmem:[%s2928_s8 + $0x8] sm:$0xff] %vm1443_vm8, %v2011_v21  ;;  %v1288_v21 = vsel %vm1284_vm6, %v1272_v53, %v1287_v30  ;;  %vm1136_vm14 = vweird.f32 %v1965_v25 }
 0x23e   :  { %1446 = vst.msk [vmem:[%s2928_s8 + $0x10] sm:$0xff] %vm1443_vm8, %v2043_v1  ;;  %1447 = vst.msk [vmem:[%s2928_s8 + $0x18] sm:$0xff] %vm1443_vm8, %v2028_v49  ;;  %1681 = vcosq.f32 %v1132_v58  ;;  %v2842_v28 = vmul.u32.u64.low %v1298_v47, %v1297_v7  ;;  %v2843_v49 = vmul.u32.u64.high %v1298_v47, %v1297_v7, %v2842_v28  ;;  %v1203_v0 = vadd.s32 %v2712_v51, %v2707_v12 }
 0x23f   :  { %1448 = vst.msk [vmem:[%s2928_s8 + $0x20] sm:$0xff] %vm1443_vm8, %v2066_v38  ;;  %1449 = vst.msk [vmem:[%s2928_s8 + $0x28] sm:$0xff] %vm1443_vm8, %v2058_v31  ;;  %1683 = vsinq.f32 %v1132_v58  ;;  %v1215_v1 = vclz %v1557_v33  ;;  %v2845_v31 = vmul.u32.u64.low %v1298_v47, %v1293_v54  ;;  %v2846_v38 = vmul.u32.u64.high %v1298_v47, %v1293_v54, %v2845_v31 }
 0x240   :  { %1450 = vst.msk [vmem:[%s2928_s8 + $0x30] sm:$0xff] %vm1443_vm8, %v2109_v27  ;;  %1451 = vst.msk [vmem:[%s2928_s8 + $0x38] sm:$0xff] %vm1443_vm8, %v2095_v20  ;;  %v1289_v27 = vsel %vm1283_vm7, %v1286_v18, %v1288_v21  ;;  %v1131_v20 = vsel %vm1046_vm2, %v1130_v15, %v2650_v32  ;;  %vm1149_vm15 = vcmp.lt.s32.totalorder %v1967_v26, 0  ;;  %vm2868_vm1 = vcmp.le.f32.partialorder %v1147_v2, 0.7853982 }
 0x241   :  { %v1558_v60 = vadd.s32 4294967294, %v1215_v1  ;;  %vm1307_vm9 = vc.u32 %v2843_v49, %v2845_v31  ;;  %v1308_v44 = vadd.s32 1, %v2846_v38  ;;  %v1305_v35 = vmul.u32 %v1298_v47, %v1289_v27 }
 0x242   :  { %v1133_v43 = vsel %vm2761_vm3, 0, %v1131_v20  ;;  %v1233_v52 = vsub.s32 4, %v2765_v37  ;;  %v1306_v2 = vadd.s32 %v2845_v31, %v2843_v49  ;;  %vm1484_vm2 = vcmask 1048320  }
 0x243   :  { %vm1559_vm10 = vcmp.lt.s32.totalorder %v1558_v60, 0  ;;  %v1309_v62 = vsel %vm1307_vm9, %v1308_v44, %v2846_v38  ;;  %v1137_v23 = vand.u32 3, %v1133_v43  ;;  %vm1239_vm6 = vweird.f32 %v1967_v26 }
 0x244   :  { %v1218_v14 = vsel %vm1559_vm10, 0, %v1558_v60  ;;  %v1310_v46 = vadd.s32 %v1309_v62, %v1305_v35  ;;  %v1234_v30 = vsel %vm1149_vm15, %v1233_v52, %v2765_v37  ;;  %vm1252_vm7 = vcmp.lt.s32.totalorder %v1972_v36, 0 }
 0x245   :  { %v1219_v9 = vsub.s32 32, %v1218_v14  ;;  %v1223_v22 = vsub.s32 4294967266, %v1218_v14  ;;  %v1220_v29 = vshll.u32 %v1211_v4, %v1218_v14  ;;  %vm1142_vm11 = vcmp.eq.s32.totalorder %v1137_v23, 2 }
 0x246   :  { %v1311_v32 = vadd.s32 536870912, %v1310_v46  ;;  %vm1139_vm12 = vcmp.eq.s32.totalorder %v1137_v23, 0  ;;  %vm1138_vm13 = vcmp.lt.s32.totalorder %v1137_v23, 2  ;;  %v1236_v58 = vsel %vm2868_vm1, 0, %v1234_v30 }
 0x247   :  { %v1221_v48 = vshrl.u32 %v1203_v0, %v1219_v9  ;;  %v1224_v53 = vadd.s32 127, %v1223_v22  ;;  %v1240_v28 = vand.u32 3, %v1236_v58  ;;  %vm1251_vm8 = vcmp.le.f32.partialorder %v1250_v16, 0.7853982 }
 0x248   :  { %v2860_v6 = vshrl.u32 %v1311_v32, 30 }
 0x249   :  { %v1222_v3 = vor.u32 %v1221_v48, %v1220_v29  ;;  %v1225_v42 = vshll.u32 %v1224_v53, 23  ;;  %vm1245_vm3 = vcmp.eq.s32.totalorder %v1240_v28, 2  ;;  %vm1242_vm4 = vcmp.eq.s32.totalorder %v1240_v28, 0 }
 0x24a   :  { %v1313_v45 = vshll.u32 %v2860_v6, 30  ;;  %vm1241_vm5 = vcmp.lt.s32.totalorder %v1240_v28, 2  ;;  %v1336_v43 = vsub.s32 4, %v2860_v6 }
 0x24b   :  { %v1682_v57 = vpop.eup %1681  ;;  %v1226_v61 = vor.u32 4788187, %v1225_v42  ;;  %v1229_v41 = vcvt.s32.f32 %v1222_v3 }
 0x24c   :  { %v1684_v12 = vpop.eup %1683  ;;  %v1143_v51 = vxor.u32 2147483648, %v1682_v57  ;;  %v1314_v59 = vsub.s32 %v1310_v46, %v1313_v45 }
 0x24d   :  { %v1140_v13 = vxor.u32 2147483648, %v1684_v12  ;;  %v1227_v11 = vand.u32 2147483647, %v1226_v61 }
 0x24e   :  { %v1144_v17 = vsel %vm1142_vm11, %v1143_v51, %v1684_v12  ;;  %v1316_v56 = vsub.s32 0, %v1314_v59 }
 0x24f   :  { %v1141_v10 = vsel %vm1139_vm12, %v1682_v57, %v1140_v13  ;;  %v1230_v34 = vmul.f32 %v1229_v41, %v1227_v11  ;;  %vm1342_vm12 = vweird.f32 %v1972_v36 }
 0x250   :  { %v1145_v55 = vsel %vm1138_vm13, %v1141_v10, %v1144_v17  ;;  %v1561_v40 = vmin.u32 %v1316_v56, %v1314_v59 }
 0x251   :  { %v1146_v19 = vsel %vm1136_vm14, nan, %v1145_v55  ;;  %v1231_v4 = vxor.u32 2147483648, %v1230_v34 }
 0x252   :  { %1470 = vrot.lane.b32.xlu1 %v1146_v19, %s1703_s28  ;;  %v1318_v39 = vclz %v1561_v40 }
 0x253   :  { %v1232_v5 = vsel %vm1149_vm15, %v1231_v4, %v1230_v34 }
 0x254   :  { %v1235_v25 = vsel %vm2868_vm1, %v1967_v26, %v1232_v5  ;;  %v1562_v24 = vadd.s32 4294967294, %v1318_v39  ;;  %v1337_v26 = vsel %vm1252_vm7, %v1336_v43, %v2860_v6 }
 0x255   :  { %1685 = vcosq.f32 %v1235_v25  ;;  %v1339_v29 = vsel %vm1251_vm8, 0, %v1337_v26 }
 0x256   :  { %1687 = vsinq.f32 %v1235_v25  ;;  %vm1563_vm0 = vcmp.lt.s32.totalorder %v1562_v24, 0  ;;  %v1343_v48 = vand.u32 3, %v1339_v29 }
 0x257   :  { %v1321_v8 = vsel %vm1563_vm0, 0, %v1562_v24 }
 0x258   :  { %v1322_v7 = vsub.s32 32, %v1321_v8  ;;  %v1326_v50 = vsub.s32 4294967266, %v1321_v8  ;;  %v1323_v54 = vshll.u32 %v1314_v59, %v1321_v8  ;;  %vm1348_vm9 = vcmp.eq.s32.totalorder %v1343_v48, 2 }
 0x259   :  { %vm1345_vm10 = vcmp.eq.s32.totalorder %v1343_v48, 0  ;;  %vm1344_vm11 = vcmp.lt.s32.totalorder %v1343_v48, 2 }
 0x25a   :  { %v1324_v47 = vshrl.u32 %v1306_v2, %v1322_v7  ;;  %v1327_v15 = vadd.s32 127, %v1326_v50 }
 0x25c   :  { %v1325_v33 = vor.u32 %v1324_v47, %v1323_v54  ;;  %v1328_v18 = vshll.u32 %v1327_v15, 23 }
 0x25e   :  { %v1329_v1 = vor.u32 4788187, %v1328_v18  ;;  %v1332_v31 = vcvt.s32.f32 %v1325_v33 }
 0x25f   :  { %v1461_v21 = vpop.permute.xlu0 %1460 }
 0x260   :  { %1485 = vst.msk [vmem:[%s2928_s8] sm:$0xff] %vm1484_vm2, %v1461_v21  ;;  %v1330_v49 = vand.u32 2147483647, %v1329_v1 }
 0x262   :  { %v1686_v37 = vpop.eup %1685  ;;  %v1333_v20 = vmul.f32 %v1332_v31, %v1330_v49 }
 0x263   :  { %v1688_v38 = vpop.eup %1687  ;;  %v1246_v60 = vxor.u32 2147483648, %v1686_v37 }
 0x264   :  { %v1243_v27 = vxor.u32 2147483648, %v1688_v38  ;;  %v1334_v35 = vxor.u32 2147483648, %v1333_v20 }
 0x265   :  { %v1247_v44 = vsel %vm1245_vm3, %v1246_v60, %v1688_v38 }
 0x266   :  { %v1244_v14 = vsel %vm1242_vm4, %v1686_v37, %v1243_v27  ;;  %v1335_v22 = vsel %vm1252_vm7, %v1334_v35, %v1333_v20 }
 0x267   :  { %v1248_v0 = vsel %vm1241_vm5, %v1244_v14, %v1247_v44  ;;  %v1338_v62 = vsel %vm1251_vm8, %v1972_v36, %v1335_v22 }
 0x268   :  { %v1249_v9 = vsel %vm1239_vm6, nan, %v1248_v0  ;;  %1689 = vcosq.f32 %v1338_v62 }
 0x269   :  { %1472 = vrot.lane.b32.xlu0 %v1249_v9, %s1703_s28  ;;  %1691 = vsinq.f32 %v1338_v62  ;;  %v1463_v46 = vpop.permute.xlu1 %1462 }
 0x26a   :  { %1486 = vst.msk [vmem:[%s2928_s8 + $0x8] sm:$0xff] %vm1484_vm2, %v1463_v46 }
 0x275   :  { %v1690_v16 = vpop.eup %1689 }
 0x276   :  { %v1692_v53 = vpop.eup %1691  ;;  %v1349_v32 = vxor.u32 2147483648, %v1690_v16 }
 0x277   :  { %v1346_v23 = vxor.u32 2147483648, %v1692_v53 }
 0x278   :  { %v1350_v3 = vsel %vm1348_vm9, %v1349_v32, %v1692_v53 }
 0x279   :  { %v1347_v42 = vsel %vm1345_vm10, %v1690_v16, %v1346_v23 }
 0x27a   :  { %v1351_v57 = vsel %vm1344_vm11, %v1347_v42, %v1350_v3 }
 0x27b   :  { %v1352_v61 = vsel %vm1342_vm12, nan, %v1351_v57 }
 0x27c   :  { %1474 = vrot.lane.b32.xlu1 %v1352_v61, %s1703_s28  ;;  %v1465_v12 = vpop.permute.xlu0 %1464 }
 0x27d   :  { %1487 = vst.msk [vmem:[%s2928_s8 + $0x10] sm:$0xff] %vm1484_vm2, %v1465_v12 }
 0x296   :  { %v1467_v6 = vpop.permute.xlu1 %1466 }
 0x297   :  { %1488 = vst.msk [vmem:[%s2928_s8 + $0x18] sm:$0xff] %vm1484_vm2, %v1467_v6 }
 0x2ad   :  { %v1469_v51 = vpop.permute.xlu0 %1468 }
 0x2ae   :  { %1489 = vst.msk [vmem:[%s2928_s8 + $0x20] sm:$0xff] %vm1484_vm2, %v1469_v51 }
 0x2c4   :  { %v1471_v36 = vpop.permute.xlu1 %1470 }
 0x2c5   :  { %1490 = vst.msk [vmem:[%s2928_s8 + $0x28] sm:$0xff] %vm1484_vm2, %v1471_v36 }
 0x2db   :  { %v1473_v45 = vpop.permute.xlu0 %1472 }
 0x2dc   :  { %1491 = vst.msk [vmem:[%s2928_s8 + $0x30] sm:$0xff] %vm1484_vm2, %v1473_v45 }
 0x2ee   :  { %v1475_v13 = vpop.permute.xlu1 %1474 }
 0x2ef   :  { %1492 = vst.msk [vmem:[%s2928_s8 + $0x38] sm:$0xff] %vm1484_vm2, %v1475_v13 }

</bundles_post_ra>
